<compile_context>
chip_gen: v7x
topology: tpu7x:2x2x1
jax: 0.10.0
libtpu: 0.0.40
codegen_flags: <defaults>
</compile_context>

<pallas_src>
from functools import partial

import jax
import jax.numpy as jnp
from jax.experimental import pallas as pl
from jax.experimental.pallas import tpu as pltpu

INPUT_SIZE = 21
HIDDEN_SIZE = 50
OUTPUT_SIZE = 24

HP = 128   # hidden size padded to one lane tile
OP = 128   # fc output padded to one lane tile
BP = 8     # batch padded to one sublane tile


def lstm_fc_kernel(x_ref, wih_ref, whh_ref, b_ref, wfc_ref, bfc_ref, out_ref,
                   xg_ref, *, T, Bp):
    """LSTM recurrence + final Linear, everything resident in VMEM.

    x_ref   : (T*Bp, I)   time-major input, rows [t0b0..t0b7, t1b0..], f32
    wih_ref : (I, 4*Hp)   input->gates, gate order [i, f, o, g], bf16
    whh_ref : (Hp, 4*Hp)  hidden->gates, same column layout, bf16, zero-padded
    b_ref   : (1, 4*Hp)   combined bias (b_ih + b_hh), f32, zero padded lanes
    wfc_ref : (Hp, Op)    fc weights, bf16, zero-padded rows/cols
    bfc_ref : (1, Op)     fc bias, f32, zero-padded
    out_ref : (Bp, Op)    fc(last hidden state), padded rows/lanes
    xg_ref  : (T*Bp, 4*Hp) VMEM scratch for the hoisted input projection
    """
    Hp = whh_ref.shape[0]

    # Hoisted input projection: one MXU matmul covering every timestep,
    # spilled to explicit VMEM scratch (not a live value across the loop).
    xg_ref[...] = (
        jnp.dot(x_ref[...].astype(jnp.bfloat16), wih_ref[...],
                preferred_element_type=jnp.float32)
        + b_ref[...]
    )

    h = jnp.zeros((Bp, Hp), jnp.float32)
    c = jnp.zeros((Bp, Hp), jnp.float32)

    # Fully unrolled recurrence (T small & static).  Only the serial
    # h @ W_hh matmul + elementwise stays on the per-step critical path.
    for t in range(T):
        # whh_ref referenced at the call site (no hoist -> no vreg spills);
        # xg tile is an 8-sublane-aligned static slice of the scratch.
        gates = xg_ref[t * Bp:(t + 1) * Bp, :] + jnp.dot(
            h.astype(jnp.bfloat16), whh_ref[...],
            preferred_element_type=jnp.float32)            # (Bp, 4*Hp) f32
        # Gate layout [i | f | o | g], each Hp wide -> 128-lane-aligned views.
        # sigmoid(x) = 0.5 * tanh(0.5 x) + 0.5 : one EUP op per region.
        ifo = 0.5 * jnp.tanh(0.5 * gates[:, :3 * Hp]) + 0.5
        g_g = jnp.tanh(gates[:, 3 * Hp:])
        i_g = ifo[:, 0 * Hp:1 * Hp]
        f_g = ifo[:, 1 * Hp:2 * Hp]
        o_g = ifo[:, 2 * Hp:3 * Hp]
        c = f_g * c + i_g * g_g
        h = o_g * jnp.tanh(c)

    out_ref[...] = (
        jnp.dot(h.astype(jnp.bfloat16), wfc_ref[...],
                preferred_element_type=jnp.float32)
        + bfc_ref[...]
    )


def lstm_model_forward(x, params):
    """x: (B, T, I) float32, batch-first (PyTorch convention)."""
    w_ih, w_hh, b_ih, b_hh, w_fc, b_fc = params
    B, T, I = x.shape
    H = w_hh.shape[1]
    O = w_fc.shape[0]
    Hp, Op, Bp = HP, OP, BP
    assert B <= Bp

    # PyTorch packs gate rows as [i, f, g, o]; we place columns as [i, f, o, g]
    # so one tanh covers a contiguous, aligned 3*Hp sigmoid block.
    perm = (0, 1, 3, 2)   # perm[new_block] = old_gate

    def pad_gates_T(w, in_dim, in_pad):
        # w: (4H, in_dim) PyTorch layout -> (in_pad, 4*Hp) transposed, permuted,
        # zero-padded (padded hidden units stay exactly 0 through the
        # recurrence), cast to bf16 for single-pass MXU matmuls.
        out = jnp.zeros((in_pad, 4 * Hp), jnp.float32)
        for new_g, old_g in enumerate(perm):
            blk = w[old_g * H:(old_g + 1) * H, :].T.astype(jnp.float32)
            out = out.at[:in_dim, new_g * Hp:new_g * Hp + H].set(blk)
        return out.astype(jnp.bfloat16)

    wih_p = pad_gates_T(w_ih, I, I)     # (I, 4*Hp)  bf16
    whh_p = pad_gates_T(w_hh, H, Hp)    # (Hp, 4*Hp) bf16

    b_sum = (b_ih + b_hh).astype(jnp.float32)
    b_p = jnp.zeros((1, 4 * Hp), jnp.float32)
    for new_g, old_g in enumerate(perm):
        b_p = b_p.at[0, new_g * Hp:new_g * Hp + H].set(
            b_sum[old_g * H:(old_g + 1) * H])

    wfc_p = jnp.zeros((Hp, Op), jnp.float32).at[:H, :O].set(
        w_fc.T.astype(jnp.float32)).astype(jnp.bfloat16)
    bfc_p = jnp.zeros((1, Op), jnp.float32).at[0, :O].set(
        b_fc.astype(jnp.float32))

    # Layout plumbing: batch-first -> time-major, batch padded to 8 sublanes,
    # flattened to (T*Bp, I) rows so every per-step slice is 8-row-aligned.
    x_tm = jnp.transpose(x, (1, 0, 2)).astype(jnp.float32)       # (T, B, I)
    x_pad = jnp.zeros((T, Bp, I), jnp.float32).at[:, :B, :].set(x_tm)
    x_2d = x_pad.reshape(T * Bp, I)

    vmem = pl.BlockSpec(memory_space=pltpu.MemorySpace.VMEM)
    out_p = pl.pallas_call(
        partial(lstm_fc_kernel, T=T, Bp=Bp),
        out_shape=jax.ShapeDtypeStruct((Bp, Op), jnp.float32),
        in_specs=[vmem] * 6,
        out_specs=vmem,
        scratch_shapes=[pltpu.VMEM((T * Bp, 4 * Hp), jnp.float32)],
    )(x_2d, wih_p, whh_p, b_p, wfc_p, bfc_p)
    return out_p[:B, :O]


def reference_forward(x, params):
    """Pure-JAX f32 reference matching PyTorch nn.LSTM + nn.Linear semantics."""
    w_ih, w_hh, b_ih, b_hh, w_fc, b_fc = params
    hp = jax.lax.Precision.HIGHEST
    B, T, I = x.shape
    H = w_hh.shape[1]
    h = jnp.zeros((B, H), jnp.float32)
    c = jnp.zeros((B, H), jnp.float32)
    for t in range(T):
        gates = (jnp.dot(x[:, t, :], w_ih.T, precision=hp)
                 + jnp.dot(h, w_hh.T, precision=hp) + b_ih + b_hh)
        i_g = jax.nn.sigmoid(gates[:, 0 * H:1 * H])
        f_g = jax.nn.sigmoid(gates[:, 1 * H:2 * H])
        g_g = jnp.tanh(gates[:, 2 * H:3 * H])
        o_g = jax.nn.sigmoid(gates[:, 3 * H:4 * H])
        c = f_g * c + i_g * g_g
        h = o_g * jnp.tanh(c)
    return jnp.dot(h, w_fc.T, precision=hp) + b_fc


def init_params(key, input_size, hidden_size, output_size):
    # Deterministic uniform(-1/sqrt(H), 1/sqrt(H)) init, mirroring PyTorch defaults.
    k = 1.0 / jnp.sqrt(jnp.float32(hidden_size))
    ks = jax.random.split(key, 6)
    w_ih = jax.random.uniform(ks[0], (4 * hidden_size, input_size),
                              minval=-k, maxval=k, dtype=jnp.float32)
    w_hh = jax.random.uniform(ks[1], (4 * hidden_size, hidden_size),
                              minval=-k, maxval=k, dtype=jnp.float32)
    b_ih = jax.random.uniform(ks[2], (4 * hidden_size,),
                              minval=-k, maxval=k, dtype=jnp.float32)
    b_hh = jax.random.uniform(ks[3], (4 * hidden_size,),
                              minval=-k, maxval=k, dtype=jnp.float32)
    w_fc = jax.random.uniform(ks[4], (output_size, hidden_size),
                              minval=-k, maxval=k, dtype=jnp.float32)
    b_fc = jax.random.uniform(ks[5], (output_size,),
                              minval=-k, maxval=k, dtype=jnp.float32)
    return (w_ih, w_hh, b_ih, b_hh, w_fc, b_fc)


if __name__ == "__main__":
    key = jax.random.PRNGKey(0)
    key_p, key_x = jax.random.split(key)

    batch, seq = 2, 8
    params = init_params(key_p, INPUT_SIZE, HIDDEN_SIZE, OUTPUT_SIZE)
    x = jax.random.normal(key_x, (batch, seq, INPUT_SIZE), dtype=jnp.float32)

    out = jax.block_until_ready(lstm_model_forward(x, params))
    ref = jax.block_until_ready(reference_forward(x, params))

    assert out.shape == (batch, OUTPUT_SIZE), out.shape
    # bf16 MXU inputs with f32 accumulation (per perf guidance) vs. a true-f32
    # reference: expected error O(1e-3); structural bugs would be O(1e-1).
    assert jnp.allclose(out, ref, rtol=5e-3, atol=5e-3), (
        f"max abs diff {jnp.max(jnp.abs(out - ref))}")

    print("KERNEL_OK")
</pallas_src>

<mosaic_0001>
module attributes {stable_mosaic.version = 11 : i64} {
  func.func @lstm_fc_kernel(%arg0: memref<64x21xf32, #tpu.memory_space<vmem>>, %arg1: memref<21x512xbf16, #tpu.memory_space<vmem>>, %arg2: memref<128x512xbf16, #tpu.memory_space<vmem>>, %arg3: memref<1x512xf32, #tpu.memory_space<vmem>>, %arg4: memref<128x128xbf16, #tpu.memory_space<vmem>>, %arg5: memref<1x128xf32, #tpu.memory_space<vmem>>, %arg6: memref<8x128xf32, #tpu.memory_space<vmem>>, %arg7: memref<64x512xf32, #tpu.memory_space<vmem>>) attributes {dimension_semantics = [], scalar_prefetch = 0 : i64, scratch_operands = 1 : i64, tpu.core_type = #tpu.core_type<tc>} {
    %c0 = arith.constant 0 : index
    %c0_0 = arith.constant 0 : index
    %0 = vector.load %arg0[%c0, %c0_0] : memref<64x21xf32, #tpu.memory_space<vmem>>, vector<64x21xf32>
    %1 = arith.truncf %0 : vector<64x21xf32> to vector<64x21xbf16>
    %c0_1 = arith.constant 0 : index
    %c0_2 = arith.constant 0 : index
    %2 = vector.load %arg1[%c0_1, %c0_2] : memref<21x512xbf16, #tpu.memory_space<vmem>>, vector<21x512xbf16>
    %cst = arith.constant dense<0.000000e+00> : vector<64x512xf32>
    %3 = tpu.matmul %1, %2, %cst {dimension_numbers = #tpu.dot_dimension_numbers<[1], [0], [0], [1], [0, 0, 1, 1], [], []>} : vector<64x21xbf16>, vector<21x512xbf16>, vector<64x512xf32> -> vector<64x512xf32>
    %c0_3 = arith.constant 0 : index
    %c0_4 = arith.constant 0 : index
    %4 = vector.load %arg3[%c0_3, %c0_4] : memref<1x512xf32, #tpu.memory_space<vmem>>, vector<1x512xf32>
    %5 = vector.broadcast %4 : vector<1x512xf32> to vector<64x512xf32>
    %6 = arith.addf %3, %5 : vector<64x512xf32>
    %c0_5 = arith.constant 0 : index
    %c0_6 = arith.constant 0 : index
    %7 = vector.load %arg7[%c0_5, %c0_6] : memref<64x512xf32, #tpu.memory_space<vmem>>, vector<64x512xf32>
    tpu.vector_store %arg7[%c0_5, %c0_6], %6 {strides = array<i32>} : memref<64x512xf32, #tpu.memory_space<vmem>>, vector<64x512xf32>,
    %cst_7 = arith.constant 0.000000e+00 : f32
    %8 = vector.broadcast %cst_7 : f32 to vector<8x128xf32>
    %cst_8 = arith.constant 0.000000e+00 : f32
    %9 = vector.broadcast %cst_8 : f32 to vector<8x128xf32>
    %c0_9 = arith.constant 0 : index
    %c0_10 = arith.constant 0 : index
    %10 = vector.load %arg7[%c0_9, %c0_10] : memref<64x512xf32, #tpu.memory_space<vmem>>, vector<8x512xf32>
    %11 = arith.truncf %8 : vector<8x128xf32> to vector<8x128xbf16>
    %c0_11 = arith.constant 0 : index
    %c0_12 = arith.constant 0 : index
    %12 = vector.load %arg2[%c0_11, %c0_12] : memref<128x512xbf16, #tpu.memory_space<vmem>>, vector<128x512xbf16>
    %cst_13 = arith.constant dense<0.000000e+00> : vector<8x512xf32>
    %13 = tpu.matmul %11, %12, %cst_13 {dimension_numbers = #tpu.dot_dimension_numbers<[1], [0], [0], [1], [0, 0, 1, 1], [], []>} : vector<8x128xbf16>, vector<128x512xbf16>, vector<8x512xf32> -> vector<8x512xf32>
    %14 = arith.addf %10, %13 : vector<8x512xf32>
    %15 = vector.extract_strided_slice %14 {offsets = [0, 0], sizes = [8, 384], strides = [1, 1]} : vector<8x512xf32> to vector<8x384xf32>
    %cst_14 = arith.constant 5.000000e-01 : f32
    %16 = vector.broadcast %cst_14 : f32 to vector<8x384xf32>
    %17 = arith.mulf %16, %15 : vector<8x384xf32>
    %18 = math.tanh %17 : vector<8x384xf32>
    %cst_15 = arith.constant 5.000000e-01 : f32
    %19 = vector.broadcast %cst_15 : f32 to vector<8x384xf32>
    %20 = arith.mulf %19, %18 : vector<8x384xf32>
    %cst_16 = arith.constant 5.000000e-01 : f32
    %21 = vector.broadcast %cst_16 : f32 to vector<8x384xf32>
    %22 = arith.addf %20, %21 : vector<8x384xf32>
    %23 = vector.extract_strided_slice %14 {offsets = [0, 384], sizes = [8, 128], strides = [1, 1]} : vector<8x512xf32> to vector<8x128xf32>
    %24 = math.tanh %23 : vector<8x128xf32>
    %25 = vector.extract_strided_slice %22 {offsets = [0, 0], sizes = [8, 128], strides = [1, 1]} : vector<8x384xf32> to vector<8x128xf32>
    %26 = vector.extract_strided_slice %22 {offsets = [0, 128], sizes = [8, 128], strides = [1, 1]} : vector<8x384xf32> to vector<8x128xf32>
    %27 = vector.extract_strided_slice %22 {offsets = [0, 256], sizes = [8, 128], strides = [1, 1]} : vector<8x384xf32> to vector<8x128xf32>
    %28 = arith.mulf %26, %9 : vector<8x128xf32>
    %29 = arith.mulf %25, %24 : vector<8x128xf32>
    %30 = arith.addf %28, %29 : vector<8x128xf32>
    %31 = math.tanh %30 : vector<8x128xf32>
    %32 = arith.mulf %27, %31 : vector<8x128xf32>
    %c8 = arith.constant 8 : index
    %c0_17 = arith.constant 0 : index
    %33 = vector.load %arg7[%c8, %c0_17] : memref<64x512xf32, #tpu.memory_space<vmem>>, vector<8x512xf32>
    %34 = arith.truncf %32 : vector<8x128xf32> to vector<8x128xbf16>
    %c0_18 = arith.constant 0 : index
    %c0_19 = arith.constant 0 : index
    %35 = vector.load %arg2[%c0_18, %c0_19] : memref<128x512xbf16, #tpu.memory_space<vmem>>, vector<128x512xbf16>
    %cst_20 = arith.constant dense<0.000000e+00> : vector<8x512xf32>
    %36 = tpu.matmul %34, %35, %cst_20 {dimension_numbers = #tpu.dot_dimension_numbers<[1], [0], [0], [1], [0, 0, 1, 1], [], []>} : vector<8x128xbf16>, vector<128x512xbf16>, vector<8x512xf32> -> vector<8x512xf32>
    %37 = arith.addf %33, %36 : vector<8x512xf32>
    %38 = vector.extract_strided_slice %37 {offsets = [0, 0], sizes = [8, 384], strides = [1, 1]} : vector<8x512xf32> to vector<8x384xf32>
    %cst_21 = arith.constant 5.000000e-01 : f32
    %39 = vector.broadcast %cst_21 : f32 to vector<8x384xf32>
    %40 = arith.mulf %39, %38 : vector<8x384xf32>
    %41 = math.tanh %40 : vector<8x384xf32>
    %cst_22 = arith.constant 5.000000e-01 : f32
    %42 = vector.broadcast %cst_22 : f32 to vector<8x384xf32>
    %43 = arith.mulf %42, %41 : vector<8x384xf32>
    %cst_23 = arith.constant 5.000000e-01 : f32
    %44 = vector.broadcast %cst_23 : f32 to vector<8x384xf32>
    %45 = arith.addf %43, %44 : vector<8x384xf32>
    %46 = vector.extract_strided_slice %37 {offsets = [0, 384], sizes = [8, 128], strides = [1, 1]} : vector<8x512xf32> to vector<8x128xf32>
    %47 = math.tanh %46 : vector<8x128xf32>
    %48 = vector.extract_strided_slice %45 {offsets = [0, 0], sizes = [8, 128], strides = [1, 1]} : vector<8x384xf32> to vector<8x128xf32>
    %49 = vector.extract_strided_slice %45 {offsets = [0, 128], sizes = [8, 128], strides = [1, 1]} : vector<8x384xf32> to vector<8x128xf32>
    %50 = vector.extract_strided_slice %45 {offsets = [0, 256], sizes = [8, 128], strides = [1, 1]} : vector<8x384xf32> to vector<8x128xf32>
    %51 = arith.mulf %49, %30 : vector<8x128xf32>
    %52 = arith.mulf %48, %47 : vector<8x128xf32>
    %53 = arith.addf %51, %52 : vector<8x128xf32>
    %54 = math.tanh %53 : vector<8x128xf32>
    %55 = arith.mulf %50, %54 : vector<8x128xf32>
    %c16 = arith.constant 16 : index
    %c0_24 = arith.constant 0 : index
    %56 = vector.load %arg7[%c16, %c0_24] : memref<64x512xf32, #tpu.memory_space<vmem>>, vector<8x512xf32>
    %57 = arith.truncf %55 : vector<8x128xf32> to vector<8x128xbf16>
    %c0_25 = arith.constant 0 : index
    %c0_26 = arith.constant 0 : index
    %58 = vector.load %arg2[%c0_25, %c0_26] : memref<128x512xbf16, #tpu.memory_space<vmem>>, vector<128x512xbf16>
    %cst_27 = arith.constant dense<0.000000e+00> : vector<8x512xf32>
    %59 = tpu.matmul %57, %58, %cst_27 {dimension_numbers = #tpu.dot_dimension_numbers<[1], [0], [0], [1], [0, 0, 1, 1], [], []>} : vector<8x128xbf16>, vector<128x512xbf16>, vector<8x512xf32> -> vector<8x512xf32>
    %60 = arith.addf %56, %59 : vector<8x512xf32>
    %61 = vector.extract_strided_slice %60 {offsets = [0, 0], sizes = [8, 384], strides = [1, 1]} : vector<8x512xf32> to vector<8x384xf32>
    %cst_28 = arith.constant 5.000000e-01 : f32
    %62 = vector.broadcast %cst_28 : f32 to vector<8x384xf32>
    %63 = arith.mulf %62, %61 : vector<8x384xf32>
    %64 = math.tanh %63 : vector<8x384xf32>
    %cst_29 = arith.constant 5.000000e-01 : f32
    %65 = vector.broadcast %cst_29 : f32 to vector<8x384xf32>
    %66 = arith.mulf %65, %64 : vector<8x384xf32>
    %cst_30 = arith.constant 5.000000e-01 : f32
    %67 = vector.broadcast %cst_30 : f32 to vector<8x384xf32>
    %68 = arith.addf %66, %67 : vector<8x384xf32>
    %69 = vector.extract_strided_slice %60 {offsets = [0, 384], sizes = [8, 128], strides = [1, 1]} : vector<8x512xf32> to vector<8x128xf32>
    %70 = math.tanh %69 : vector<8x128xf32>
    %71 = vector.extract_strided_slice %68 {offsets = [0, 0], sizes = [8, 128], strides = [1, 1]} : vector<8x384xf32> to vector<8x128xf32>
    %72 = vector.extract_strided_slice %68 {offsets = [0, 128], sizes = [8, 128], strides = [1, 1]} : vector<8x384xf32> to vector<8x128xf32>
    %73 = vector.extract_strided_slice %68 {offsets = [0, 256], sizes = [8, 128], strides = [1, 1]} : vector<8x384xf32> to vector<8x128xf32>
    %74 = arith.mulf %72, %53 : vector<8x128xf32>
    %75 = arith.mulf %71, %70 : vector<8x128xf32>
    %76 = arith.addf %74, %75 : vector<8x128xf32>
    %77 = math.tanh %76 : vector<8x128xf32>
    %78 = arith.mulf %73, %77 : vector<8x128xf32>
    %c24 = arith.constant 24 : index
    %c0_31 = arith.constant 0 : index
    %79 = vector.load %arg7[%c24, %c0_31] : memref<64x512xf32, #tpu.memory_space<vmem>>, vector<8x512xf32>
    %80 = arith.truncf %78 : vector<8x128xf32> to vector<8x128xbf16>
    %c0_32 = arith.constant 0 : index
    %c0_33 = arith.constant 0 : index
    %81 = vector.load %arg2[%c0_32, %c0_33] : memref<128x512xbf16, #tpu.memory_space<vmem>>, vector<128x512xbf16>
    %cst_34 = arith.constant dense<0.000000e+00> : vector<8x512xf32>
    %82 = tpu.matmul %80, %81, %cst_34 {dimension_numbers = #tpu.dot_dimension_numbers<[1], [0], [0], [1], [0, 0, 1, 1], [], []>} : vector<8x128xbf16>, vector<128x512xbf16>, vector<8x512xf32> -> vector<8x512xf32>
    %83 = arith.addf %79, %82 : vector<8x512xf32>
    %84 = vector.extract_strided_slice %83 {offsets = [0, 0], sizes = [8, 384], strides = [1, 1]} : vector<8x512xf32> to vector<8x384xf32>
    %cst_35 = arith.constant 5.000000e-01 : f32
    %85 = vector.broadcast %cst_35 : f32 to vector<8x384xf32>
    %86 = arith.mulf %85, %84 : vector<8x384xf32>
    %87 = math.tanh %86 : vector<8x384xf32>
    %cst_36 = arith.constant 5.000000e-01 : f32
    %88 = vector.broadcast %cst_36 : f32 to vector<8x384xf32>
    %89 = arith.mulf %88, %87 : vector<8x384xf32>
    %cst_37 = arith.constant 5.000000e-01 : f32
    %90 = vector.broadcast %cst_37 : f32 to vector<8x384xf32>
    %91 = arith.addf %89, %90 : vector<8x384xf32>
    %92 = vector.extract_strided_slice %83 {offsets = [0, 384], sizes = [8, 128], strides = [1, 1]} : vector<8x512xf32> to vector<8x128xf32>
    %93 = math.tanh %92 : vector<8x128xf32>
    %94 = vector.extract_strided_slice %91 {offsets = [0, 0], sizes = [8, 128], strides = [1, 1]} : vector<8x384xf32> to vector<8x128xf32>
    %95 = vector.extract_strided_slice %91 {offsets = [0, 128], sizes = [8, 128], strides = [1, 1]} : vector<8x384xf32> to vector<8x128xf32>
    %96 = vector.extract_strided_slice %91 {offsets = [0, 256], sizes = [8, 128], strides = [1, 1]} : vector<8x384xf32> to vector<8x128xf32>
    %97 = arith.mulf %95, %76 : vector<8x128xf32>
    %98 = arith.mulf %94, %93 : vector<8x128xf32>
    %99 = arith.addf %97, %98 : vector<8x128xf32>
    %100 = math.tanh %99 : vector<8x128xf32>
    %101 = arith.mulf %96, %100 : vector<8x128xf32>
    %c32 = arith.constant 32 : index
    %c0_38 = arith.constant 0 : index
    %102 = vector.load %arg7[%c32, %c0_38] : memref<64x512xf32, #tpu.memory_space<vmem>>, vector<8x512xf32>
    %103 = arith.truncf %101 : vector<8x128xf32> to vector<8x128xbf16>
    %c0_39 = arith.constant 0 : index
    %c0_40 = arith.constant 0 : index
    %104 = vector.load %arg2[%c0_39, %c0_40] : memref<128x512xbf16, #tpu.memory_space<vmem>>, vector<128x512xbf16>
    %cst_41 = arith.constant dense<0.000000e+00> : vector<8x512xf32>
    %105 = tpu.matmul %103, %104, %cst_41 {dimension_numbers = #tpu.dot_dimension_numbers<[1], [0], [0], [1], [0, 0, 1, 1], [], []>} : vector<8x128xbf16>, vector<128x512xbf16>, vector<8x512xf32> -> vector<8x512xf32>
    %106 = arith.addf %102, %105 : vector<8x512xf32>
    %107 = vector.extract_strided_slice %106 {offsets = [0, 0], sizes = [8, 384], strides = [1, 1]} : vector<8x512xf32> to vector<8x384xf32>
    %cst_42 = arith.constant 5.000000e-01 : f32
    %108 = vector.broadcast %cst_42 : f32 to vector<8x384xf32>
    %109 = arith.mulf %108, %107 : vector<8x384xf32>
    %110 = math.tanh %109 : vector<8x384xf32>
    %cst_43 = arith.constant 5.000000e-01 : f32
    %111 = vector.broadcast %cst_43 : f32 to vector<8x384xf32>
    %112 = arith.mulf %111, %110 : vector<8x384xf32>
    %cst_44 = arith.constant 5.000000e-01 : f32
    %113 = vector.broadcast %cst_44 : f32 to vector<8x384xf32>
    %114 = arith.addf %112, %113 : vector<8x384xf32>
    %115 = vector.extract_strided_slice %106 {offsets = [0, 384], sizes = [8, 128], strides = [1, 1]} : vector<8x512xf32> to vector<8x128xf32>
    %116 = math.tanh %115 : vector<8x128xf32>
    %117 = vector.extract_strided_slice %114 {offsets = [0, 0], sizes = [8, 128], strides = [1, 1]} : vector<8x384xf32> to vector<8x128xf32>
    %118 = vector.extract_strided_slice %114 {offsets = [0, 128], sizes = [8, 128], strides = [1, 1]} : vector<8x384xf32> to vector<8x128xf32>
    %119 = vector.extract_strided_slice %114 {offsets = [0, 256], sizes = [8, 128], strides = [1, 1]} : vector<8x384xf32> to vector<8x128xf32>
    %120 = arith.mulf %118, %99 : vector<8x128xf32>
    %121 = arith.mulf %117, %116 : vector<8x128xf32>
    %122 = arith.addf %120, %121 : vector<8x128xf32>
    %123 = math.tanh %122 : vector<8x128xf32>
    %124 = arith.mulf %119, %123 : vector<8x128xf32>
    %c40 = arith.constant 40 : index
    %c0_45 = arith.constant 0 : index
    %125 = vector.load %arg7[%c40, %c0_45] : memref<64x512xf32, #tpu.memory_space<vmem>>, vector<8x512xf32>
    %126 = arith.truncf %124 : vector<8x128xf32> to vector<8x128xbf16>
    %c0_46 = arith.constant 0 : index
    %c0_47 = arith.constant 0 : index
    %127 = vector.load %arg2[%c0_46, %c0_47] : memref<128x512xbf16, #tpu.memory_space<vmem>>, vector<128x512xbf16>
    %cst_48 = arith.constant dense<0.000000e+00> : vector<8x512xf32>
    %128 = tpu.matmul %126, %127, %cst_48 {dimension_numbers = #tpu.dot_dimension_numbers<[1], [0], [0], [1], [0, 0, 1, 1], [], []>} : vector<8x128xbf16>, vector<128x512xbf16>, vector<8x512xf32> -> vector<8x512xf32>
    %129 = arith.addf %125, %128 : vector<8x512xf32>
    %130 = vector.extract_strided_slice %129 {offsets = [0, 0], sizes = [8, 384], strides = [1, 1]} : vector<8x512xf32> to vector<8x384xf32>
    %cst_49 = arith.constant 5.000000e-01 : f32
    %131 = vector.broadcast %cst_49 : f32 to vector<8x384xf32>
    %132 = arith.mulf %131, %130 : vector<8x384xf32>
    %133 = math.tanh %132 : vector<8x384xf32>
    %cst_50 = arith.constant 5.000000e-01 : f32
    %134 = vector.broadcast %cst_50 : f32 to vector<8x384xf32>
    %135 = arith.mulf %134, %133 : vector<8x384xf32>
    %cst_51 = arith.constant 5.000000e-01 : f32
    %136 = vector.broadcast %cst_51 : f32 to vector<8x384xf32>
    %137 = arith.addf %135, %136 : vector<8x384xf32>
    %138 = vector.extract_strided_slice %129 {offsets = [0, 384], sizes = [8, 128], strides = [1, 1]} : vector<8x512xf32> to vector<8x128xf32>
    %139 = math.tanh %138 : vector<8x128xf32>
    %140 = vector.extract_strided_slice %137 {offsets = [0, 0], sizes = [8, 128], strides = [1, 1]} : vector<8x384xf32> to vector<8x128xf32>
    %141 = vector.extract_strided_slice %137 {offsets = [0, 128], sizes = [8, 128], strides = [1, 1]} : vector<8x384xf32> to vector<8x128xf32>
    %142 = vector.extract_strided_slice %137 {offsets = [0, 256], sizes = [8, 128], strides = [1, 1]} : vector<8x384xf32> to vector<8x128xf32>
    %143 = arith.mulf %141, %122 : vector<8x128xf32>
    %144 = arith.mulf %140, %139 : vector<8x128xf32>
    %145 = arith.addf %143, %144 : vector<8x128xf32>
    %146 = math.tanh %145 : vector<8x128xf32>
    %147 = arith.mulf %142, %146 : vector<8x128xf32>
    %c48 = arith.constant 48 : index
    %c0_52 = arith.constant 0 : index
    %148 = vector.load %arg7[%c48, %c0_52] : memref<64x512xf32, #tpu.memory_space<vmem>>, vector<8x512xf32>
    %149 = arith.truncf %147 : vector<8x128xf32> to vector<8x128xbf16>
    %c0_53 = arith.constant 0 : index
    %c0_54 = arith.constant 0 : index
    %150 = vector.load %arg2[%c0_53, %c0_54] : memref<128x512xbf16, #tpu.memory_space<vmem>>, vector<128x512xbf16>
    %cst_55 = arith.constant dense<0.000000e+00> : vector<8x512xf32>
    %151 = tpu.matmul %149, %150, %cst_55 {dimension_numbers = #tpu.dot_dimension_numbers<[1], [0], [0], [1], [0, 0, 1, 1], [], []>} : vector<8x128xbf16>, vector<128x512xbf16>, vector<8x512xf32> -> vector<8x512xf32>
    %152 = arith.addf %148, %151 : vector<8x512xf32>
    %153 = vector.extract_strided_slice %152 {offsets = [0, 0], sizes = [8, 384], strides = [1, 1]} : vector<8x512xf32> to vector<8x384xf32>
    %cst_56 = arith.constant 5.000000e-01 : f32
    %154 = vector.broadcast %cst_56 : f32 to vector<8x384xf32>
    %155 = arith.mulf %154, %153 : vector<8x384xf32>
    %156 = math.tanh %155 : vector<8x384xf32>
    %cst_57 = arith.constant 5.000000e-01 : f32
    %157 = vector.broadcast %cst_57 : f32 to vector<8x384xf32>
    %158 = arith.mulf %157, %156 : vector<8x384xf32>
    %cst_58 = arith.constant 5.000000e-01 : f32
    %159 = vector.broadcast %cst_58 : f32 to vector<8x384xf32>
    %160 = arith.addf %158, %159 : vector<8x384xf32>
    %161 = vector.extract_strided_slice %152 {offsets = [0, 384], sizes = [8, 128], strides = [1, 1]} : vector<8x512xf32> to vector<8x128xf32>
    %162 = math.tanh %161 : vector<8x128xf32>
    %163 = vector.extract_strided_slice %160 {offsets = [0, 0], sizes = [8, 128], strides = [1, 1]} : vector<8x384xf32> to vector<8x128xf32>
    %164 = vector.extract_strided_slice %160 {offsets = [0, 128], sizes = [8, 128], strides = [1, 1]} : vector<8x384xf32> to vector<8x128xf32>
    %165 = vector.extract_strided_slice %160 {offsets = [0, 256], sizes = [8, 128], strides = [1, 1]} : vector<8x384xf32> to vector<8x128xf32>
    %166 = arith.mulf %164, %145 : vector<8x128xf32>
    %167 = arith.mulf %163, %162 : vector<8x128xf32>
    %168 = arith.addf %166, %167 : vector<8x128xf32>
    %169 = math.tanh %168 : vector<8x128xf32>
    %170 = arith.mulf %165, %169 : vector<8x128xf32>
    %c56 = arith.constant 56 : index
    %c0_59 = arith.constant 0 : index
    %171 = vector.load %arg7[%c56, %c0_59] : memref<64x512xf32, #tpu.memory_space<vmem>>, vector<8x512xf32>
    %172 = arith.truncf %170 : vector<8x128xf32> to vector<8x128xbf16>
    %c0_60 = arith.constant 0 : index
    %c0_61 = arith.constant 0 : index
    %173 = vector.load %arg2[%c0_60, %c0_61] : memref<128x512xbf16, #tpu.memory_space<vmem>>, vector<128x512xbf16>
    %cst_62 = arith.constant dense<0.000000e+00> : vector<8x512xf32>
    %174 = tpu.matmul %172, %173, %cst_62 {dimension_numbers = #tpu.dot_dimension_numbers<[1], [0], [0], [1], [0, 0, 1, 1], [], []>} : vector<8x128xbf16>, vector<128x512xbf16>, vector<8x512xf32> -> vector<8x512xf32>
    %175 = arith.addf %171, %174 : vector<8x512xf32>
    %176 = vector.extract_strided_slice %175 {offsets = [0, 0], sizes = [8, 384], strides = [1, 1]} : vector<8x512xf32> to vector<8x384xf32>
    %cst_63 = arith.constant 5.000000e-01 : f32
    %177 = vector.broadcast %cst_63 : f32 to vector<8x384xf32>
    %178 = arith.mulf %177, %176 : vector<8x384xf32>
    %179 = math.tanh %178 : vector<8x384xf32>
    %cst_64 = arith.constant 5.000000e-01 : f32
    %180 = vector.broadcast %cst_64 : f32 to vector<8x384xf32>
    %181 = arith.mulf %180, %179 : vector<8x384xf32>
    %cst_65 = arith.constant 5.000000e-01 : f32
    %182 = vector.broadcast %cst_65 : f32 to vector<8x384xf32>
    %183 = arith.addf %181, %182 : vector<8x384xf32>
    %184 = vector.extract_strided_slice %175 {offsets = [0, 384], sizes = [8, 128], strides = [1, 1]} : vector<8x512xf32> to vector<8x128xf32>
    %185 = math.tanh %184 : vector<8x128xf32>
    %186 = vector.extract_strided_slice %183 {offsets = [0, 0], sizes = [8, 128], strides = [1, 1]} : vector<8x384xf32> to vector<8x128xf32>
    %187 = vector.extract_strided_slice %183 {offsets = [0, 128], sizes = [8, 128], strides = [1, 1]} : vector<8x384xf32> to vector<8x128xf32>
    %188 = vector.extract_strided_slice %183 {offsets = [0, 256], sizes = [8, 128], strides = [1, 1]} : vector<8x384xf32> to vector<8x128xf32>
    %189 = arith.mulf %187, %168 : vector<8x128xf32>
    %190 = arith.mulf %186, %185 : vector<8x128xf32>
    %191 = arith.addf %189, %190 : vector<8x128xf32>
    %192 = math.tanh %191 : vector<8x128xf32>
    %193 = arith.mulf %188, %192 : vector<8x128xf32>
    %194 = arith.truncf %193 : vector<8x128xf32> to vector<8x128xbf16>
    %c0_66 = arith.constant 0 : index
    %c0_67 = arith.constant 0 : index
    %195 = vector.load %arg4[%c0_66, %c0_67] : memref<128x128xbf16, #tpu.memory_space<vmem>>, vector<128x128xbf16>
    %cst_68 = arith.constant dense<0.000000e+00> : vector<8x128xf32>
    %196 = tpu.matmul %194, %195, %cst_68 {dimension_numbers = #tpu.dot_dimension_numbers<[1], [0], [0], [1], [0, 0, 1, 1], [], []>} : vector<8x128xbf16>, vector<128x128xbf16>, vector<8x128xf32> -> vector<8x128xf32>
    %c0_69 = arith.constant 0 : index
    %c0_70 = arith.constant 0 : index
    %197 = vector.load %arg5[%c0_69, %c0_70] : memref<1x128xf32, #tpu.memory_space<vmem>>, vector<1x128xf32>
    %198 = vector.broadcast %197 : vector<1x128xf32> to vector<8x128xf32>
    %199 = arith.addf %196, %198 : vector<8x128xf32>
    %c0_71 = arith.constant 0 : index
    %c0_72 = arith.constant 0 : index
    %200 = vector.load %arg6[%c0_71, %c0_72] : memref<8x128xf32, #tpu.memory_space<vmem>>, vector<8x128xf32>
    tpu.vector_store %arg6[%c0_71, %c0_72], %199 {strides = array<i32>} : memref<8x128xf32, #tpu.memory_space<vmem>>, vector<8x128xf32>,
    return
  }
}

</mosaic_0001>

<bundles_post_ra>
// kernel: tpu_custom_call.1
= control target key start
LH: loop header
LB: loop body
LE: loop exit
PB: predicated region body
PF: predicated region fallthrough
CT: control target
= control target key end

     0   :  { %11 = vsyncpa [#allocation4], 0  ;;  %s2527_s0 = inlined_call_operand.vmem [shape: f32[64,21], index: 0, kind: input, shape index: {}]   ;;  %s2528_s1 = inlined_call_operand.hbm [shape: bf16[21,512], index: 1, kind: input, shape index: {}]   ;;  %s2529_s2 = inlined_call_operand.hbm [shape: bf16[128,512], index: 2, kind: input, shape index: {}]   ;;  %s2530_s3 = inlined_call_operand.vmem [shape: f32[1,512], index: 3, kind: input, shape index: {}]   ;;  %s2531_s4 = inlined_call_operand.vmem [shape: bf16[128,128], index: 4, kind: input, shape index: {}]   ;;  %s2532_s5 = inlined_call_operand.vmem [shape: f32[1,128], index: 5, kind: input, shape index: {}]   ;;  %s2533_s6 = inlined_call_operand.hbm [shape: f32[8,128], index: 6, kind: output, shape index: {}]  }
   0x1   :  { %12 = vsyncpa [#allocation7], 0 }
   0x2   :  { %13 = vsyncpa [#allocation5], 0  ;;  %s1867_s21 = smov [#allocation3]   ;;  %s1795_s25 = scalar_lea.hbm %s2528_s1, 768 }
   0x3   :  { %s21_s22 = sshll.u32 %s1867_s21, 4  ;;  %p1796_p0 = scmp.ne.s32.totalorder %s2528_s1, %s1795_s25  ;;  %s22_s22 = int_to_ptr.vmem [resolvable:$true] %s21_s22 }
   0x4   :  { %p1799_p1 = scmp.lt.u32.totalorder %s1795_s25, %s2528_s1 }
   0x6   :  { %p1801_p2 = pnand %p1799_p1, %p1796_p0 }
   0x8   :  { %1804 = shalt.err (!%p1801_p2)
}
   0x9   :  { %s1805_s30 = scalar_lea.vmem %s22_s22, 768  ;;  %p1810_p4 = scmp.lt.s32.totalorder %s22_s22, %s22_s22 }
   0xa   :  { %p1806_p3 = scmp.ne.s32.totalorder %s22_s22, %s1805_s30  ;;  %p1811_p5 = scmp.lt.s32.totalorder %s1805_s30, %s1805_s30 }
   0xc   :  { %p1812_p6 = por %p1811_p5, %p1810_p4 }
   0xe   :  { %p1813_p7 = pnand %p1812_p6, %p1806_p3 }
  0x10   :  { %1816 = shalt.err (!%p1813_p7)
}
  0x11   :  { %s1868_s7 = smov 256   ;;  %s1869_s8 = smov 16  }
  0x12   :  { %27 = dma.hbm_to_vmem [thread:$0]  %s2528_s1, 768, %s22_s22, [#allocation4], %s1868_s7, %s1868_s7, %s1869_s8  }
  0x13   :  { %s1870_s11 = smov [#allocation6]   ;;  %s1817_s15 = scalar_lea.hbm %s2529_s2, 4096 }
  0x14   :  { %s33_s12 = sshll.u32 %s1870_s11, 4  ;;  %p1818_p8 = scmp.ne.s32.totalorder %s2529_s2, %s1817_s15  ;;  %s34_s12 = int_to_ptr.vmem [resolvable:$true] %s33_s12 }
  0x15   :  { %p1821_p9 = scmp.lt.u32.totalorder %s1817_s15, %s2529_s2 }
  0x17   :  { %p1823_p10 = pnand %p1821_p9, %p1818_p8 }
  0x19   :  { %1826 = shalt.err (!%p1823_p10)
}
  0x1a   :  { %s1827_s20 = scalar_lea.vmem %s34_s12, 4096  ;;  %p1832_p12 = scmp.lt.s32.totalorder %s34_s12, %s34_s12 }
  0x1b   :  { %p1828_p11 = scmp.ne.s32.totalorder %s34_s12, %s1827_s20  ;;  %p1833_p13 = scmp.lt.s32.totalorder %s1827_s20, %s1827_s20 }
  0x1d   :  { %p1834_p0 = por %p1833_p13, %p1832_p12 }
  0x1f   :  { %p1835_p1 = pnand %p1834_p0, %p1828_p11 }
  0x21   :  { %1838 = shalt.err (!%p1835_p1)
}
  0x22   :  { %39 = dma.hbm_to_vmem [thread:$0]  %s2529_s2, 4096, %s34_s12, [#allocation7], %s1868_s7, %s1868_s7, %s1869_s8  }
  0x23   :  { %1861 = dma.done.wait [#allocation4], 768  }
  0x24   :  { %1862 = vsyncadd [#allocation4], 4294966528 }
  0x25   :  { %1863 = dma.done.wait [#allocation7], 4096  }
  0x26   :  { %1864 = vsyncadd [#allocation7], 4294963200  ;;  %v2534_v0 = vmov 0   ;;  %vm136_vm0 = vcmask 1041408   ;;  %vm137_vm1 = vcmask 1042432   ;;  %v1872_v1 = vmov 65535  }
  0x27   :  { %184 = vmatprep.mubr.bf16.mxu0 %v2534_v0  ;;  %257 = vmatprep.mubr.bf16.mxu1 %v2534_v0  ;;  %v138_v2 = vsel %vm136_vm0, 4294967295, %v1872_v1  ;;  %v1617_v3 = vld [vmem:[#allocation3 + $0x4] ss:$16 sps:$4 sm:$0xff]   ;;  %v1619_v4 = vld [vmem:[#allocation3 + $0xc] ss:$16 sps:$4 sm:$0xff]   ;;  %vm123_vm2 = vcmask 171008   ;;  %v73_v62 = vlaneseq }
  0x28   :  { %v139_v5 = vsel %vm137_vm1, %v138_v2, 0  ;;  %152 = vmatprep.subr.bf16.mxu0 %v1617_v3  ;;  %v1621_v6 = vld [vmem:[#allocation3] ss:$16 sps:$4 sm:$0xff]   ;;  %v1622_v7 = vld [vmem:[#allocation3 + $0x8] ss:$16 sps:$4 sm:$0xff]   ;;  %225 = vmatprep.subr.bf16.mxu1 %v1619_v4  ;;  %vm1874_vm3 = vmmov 0  }
  0x29   :  { %v69_v8 = vld [vmem:[#allocation3 + $0x20] sm:$0x77]  ;;  %v70_v10 = vld [vmem:[#allocation3 + $0x28] sm:$0x77]  ;;  %153 = vmatpush1.bf16.msra.mxu0 %v1621_v6  ;;  %226 = vmatpush1.bf16.msra.mxu1 %v1622_v7  ;;  %v55_v29 = vld [vmem:[%s2527_s0 + $0x10] sm:$0xff]  ;;  %v74_v63 = vshrl.u32 %v73_v62, 7 }
  0x2a   :  { %v1527_v9 = vcombine.high %v69_v8, %v69_v8  ;;  %v1526_v11 = vcombine.low %v69_v8, %v69_v8  ;;  %v53_v12 = vld [vmem:[%s2527_s0] sm:$0xff]  ;;  %v1529_v13 = vcombine.high %v70_v10, %v70_v10  ;;  %v1528_v14 = vcombine.low %v70_v10, %v70_v10  ;;  %v54_v15 = vld [vmem:[%s2527_s0 + $0x8] sm:$0xff]  ;;  %v56_v30 = vld [vmem:[%s2527_s0 + $0x18] sm:$0xff]  ;;  %s1875_s28 = smov [#allocation8]  }
  0x2b   :  { %v1943_v18 = vld [vmem:[#allocation6 + $0x4] ss:$16 sps:$4 sm:$0xff]   ;;  %v1945_v21 = vld [vmem:[#allocation6 + $0xc] ss:$16 sps:$4 sm:$0xff]   ;;  %v61_v22 = vpack.c.bf16 %v54_v15, %v53_v12  ;;  %v1947_v23 = vld [vmem:[#allocation6] ss:$16 sps:$4 sm:$0xff]   ;;  %v62_v33 = vpack.c.bf16 %v56_v30, %v55_v29 }
  0x2c   :  { %v144_v16 = vand.u32 %v1527_v9, %v139_v5  ;;  %v141_v17 = vand.u32 %v1526_v11, %v139_v5  ;;  %v150_v19 = vand.u32 %v1529_v13, %v139_v5  ;;  %v147_v20 = vand.u32 %v1528_v14, %v139_v5  ;;  %v1950_v24 = vld [vmem:[#allocation6 + $0x8] ss:$16 sps:$4 sm:$0xff]   ;;  %v1952_v25 = vld [vmem:[#allocation6 + $0x24] ss:$16 sps:$4 sm:$0xff]   ;;  %v1954_v26 = vld [vmem:[#allocation6 + $0x2c] ss:$16 sps:$4 sm:$0xff]  }
  0x2d   :  { %v1957_v27 = vld [vmem:[#allocation6 + $0x20] ss:$16 sps:$4 sm:$0xff]   ;;  %v1960_v28 = vld [vmem:[#allocation6 + $0x28] ss:$16 sps:$4 sm:$0xff]   ;;  %v1972_v31 = vld [vmem:[#allocation6 + $0x44] ss:$16 sps:$4 sm:$0xff]  }
  0x2e   :  { %154 = vmatprep.subr.bf16.mxu0 %v144_v16  ;;  %227 = vmatprep.subr.bf16.mxu1 %v150_v19  ;;  %v1976_v32 = vld [vmem:[#allocation6 + $0x4c] ss:$16 sps:$4 sm:$0xff]   ;;  %v1979_v34 = vld [vmem:[#allocation6 + $0x40] ss:$16 sps:$4 sm:$0xff]   ;;  %v1982_v35 = vld [vmem:[#allocation6 + $0x48] ss:$16 sps:$4 sm:$0xff]  }
  0x2f   :  { %155 = vmatpush1.bf16.msra.mxu0 %v141_v17  ;;  %228 = vmatpush1.bf16.msra.mxu1 %v147_v20  ;;  %v1986_v36 = vld [vmem:[#allocation6 + $0x64] ss:$16 sps:$4 sm:$0xff]   ;;  %v1989_v37 = vld [vmem:[#allocation6 + $0x6c] ss:$16 sps:$4 sm:$0xff]   ;;  %v1992_v38 = vld [vmem:[#allocation6 + $0x60] ss:$16 sps:$4 sm:$0xff]  }
  0x30   :  { %526 = vmatprep.subr.bf16.mxu0 %v1943_v18  ;;  %567 = vmatprep.subr.bf16.mxu1 %v1945_v21  ;;  %v57_v39 = vld [vmem:[%s2527_s0 + $0x20] sm:$0xff]  ;;  %v58_v40 = vld [vmem:[%s2527_s0 + $0x28] sm:$0xff]  ;;  %v59_v50 = vld [vmem:[%s2527_s0 + $0x30] sm:$0xff]  ;;  %v83_v1 = vsub.s32 2, %v74_v63  ;;  %v75_v2 = vsub.s32 0, %v74_v63  ;;  %v87_v3 = vsub.s32 3, %v74_v63 }
  0x31   :  { %v2004_v41 = vld [vmem:[#allocation6 + $0x68] ss:$16 sps:$4 sm:$0xff]   ;;  %v2006_v42 = vld [vmem:[#allocation6 + $0x84] ss:$16 sps:$4 sm:$0xff]   ;;  %v2010_v43 = vld [vmem:[#allocation6 + $0x8c] ss:$16 sps:$4 sm:$0xff]   ;;  %v63_v44 = vpack.c.bf16 %v58_v40, %v57_v39 }
  0x32   :  { %1530 = vmatmul.mubr.msk.bf16.vlgmr.msra.gmra.mrb[0].mxu0 %vm123_vm2, %v61_v22  ;;  %1534 = vmatmul.mubr.msk.bf16.vlgmr.msra.gmra.mrb[0].mxu1 %vm123_vm2, %v61_v22  ;;  %v2013_v45 = vld [vmem:[#allocation6 + $0x80] ss:$16 sps:$4 sm:$0xff]   ;;  %v2016_v46 = vld [vmem:[#allocation6 + $0x88] ss:$16 sps:$4 sm:$0xff]   ;;  %v2018_v47 = vld [vmem:[#allocation6 + $0xa4] ss:$16 sps:$4 sm:$0xff]  }
  0x33   :  { %527 = vmatpush1.bf16.msra.mxu0 %v1947_v23  ;;  %568 = vmatpush1.bf16.msra.mxu1 %v1950_v24  ;;  %v2022_v48 = vld [vmem:[#allocation6 + $0xac] ss:$16 sps:$4 sm:$0xff]   ;;  %v2025_v49 = vld [vmem:[#allocation6 + $0xa0] ss:$16 sps:$4 sm:$0xff]   ;;  %v2031_v51 = vld [vmem:[#allocation6 + $0xa8] ss:$16 sps:$4 sm:$0xff]  }
  0x34   :  { %528 = vmatprep.subr.bf16.mxu0 %v1952_v25  ;;  %569 = vmatprep.subr.bf16.mxu1 %v1954_v26  ;;  %v60_v52 = vld [vmem:[%s2527_s0 + $0x38] sm:$0xff]  ;;  %v2036_v53 = vld [vmem:[#allocation6 + $0xc4] ss:$16 sps:$4 sm:$0xff]   ;;  %v2046_v55 = vld [vmem:[#allocation6 + $0xc0] ss:$16 sps:$4 sm:$0xff]   ;;  %v79_v5 = vsub.s32 1, %v74_v63 }
  0x35   :  { %194 = vmatprep.mubr.bf16.mxu0 %v2534_v0  ;;  %267 = vmatprep.mubr.bf16.mxu1 %v2534_v0  ;;  %v2040_v54 = vld [vmem:[#allocation6 + $0xcc] ss:$16 sps:$4 sm:$0xff]   ;;  %v64_v56 = vpack.c.bf16 %v60_v52, %v59_v50  ;;  %v2052_v57 = vld [vmem:[#allocation6 + $0xc8] ss:$16 sps:$4 sm:$0xff]   ;;  %v2054_v58 = vld [vmem:[#allocation6 + $0xe4] ss:$16 sps:$4 sm:$0xff]  }
  0x36   :  { %v2057_v59 = vld [vmem:[#allocation6 + $0xec] ss:$16 sps:$4 sm:$0xff]   ;;  %v2062_v60 = vld [vmem:[#allocation6 + $0xe0] ss:$16 sps:$4 sm:$0xff]   ;;  %v2066_v61 = vld [vmem:[#allocation6 + $0xe8] ss:$16 sps:$4 sm:$0xff]  }
  0x37   :  { %529 = vmatpush1.bf16.msra.mxu0 %v1957_v27  ;;  %570 = vmatpush1.bf16.msra.mxu1 %v1960_v28  ;;  %v71_v4 = vld [vmem:[%s2530_s3] sm:$0xf]  ;;  %s1512_s29 = sshll.u32 %s1875_s28, 4  ;;  %s1513_s29 = int_to_ptr.vmem [resolvable:$true] %s1512_s29 }
  0x38   :  { %530 = vmatprep.subr.bf16.mxu0 %v1972_v31  ;;  %571 = vmatprep.subr.bf16.mxu1 %v1976_v32  ;;  %v2116_v7 = vrot.slane %v71_v4, %v83_v1  ;;  %v76_v8 = vrot.slane %v71_v4, %v75_v2  ;;  %v2118_v11 = vrot.slane %v71_v4, %v87_v3  ;;  %s1839_s30 = scalar_lea.vmem %s1513_s29, 128  ;;  %p1844_p3 = scmp.lt.s32.totalorder %s1513_s29, %s1513_s29 }
  0x39   :  { %v80_v12 = vrot.slane %v71_v4, %v79_v5  ;;  %p1840_p2 = scmp.ne.s32.totalorder %s1513_s29, %s1839_s30  ;;  %p1845_p4 = scmp.lt.s32.totalorder %s1839_s30, %s1839_s30 }
  0x3a   :  { %1531 = vmatmul.mubr.msk.bf16.gmra.mrb[4].mxu0 %vm123_vm2, %v62_v33  ;;  %1535 = vmatmul.mubr.msk.bf16.gmra.mrb[4].mxu1 %vm123_vm2, %v62_v33 }
  0x3b   :  { %531 = vmatpush1.bf16.msra.mxu0 %v1979_v34  ;;  %572 = vmatpush1.bf16.msra.mxu1 %v1982_v35  ;;  %p1846_p5 = por %p1845_p4, %p1844_p3 }
  0x3c   :  { %532 = vmatprep.subr.bf16.mxu0 %v1986_v36  ;;  %573 = vmatprep.subr.bf16.mxu1 %v1989_v37 }
  0x3d   :  { %204 = vmatprep.mubr.bf16.mxu0 %v2534_v0  ;;  %277 = vmatprep.mubr.bf16.mxu1 %v2534_v0  ;;  %p1847_p6 = pnand %p1846_p5, %p1840_p2 }
  0x3f   :  { %533 = vmatpush1.bf16.msra.mxu0 %v1992_v38  ;;  %574 = vmatpush1.bf16.msra.mxu1 %v2004_v41 }
  0x40   :  { %534 = vmatprep.subr.bf16.mxu0 %v2006_v42  ;;  %575 = vmatprep.subr.bf16.mxu1 %v2010_v43 }
  0x42   :  { %1532 = vmatmul.mubr.msk.bf16.gmra.mrb[8].mxu0 %vm123_vm2, %v63_v44  ;;  %1536 = vmatmul.mubr.msk.bf16.gmra.mrb[8].mxu1 %vm123_vm2, %v63_v44 }
  0x43   :  { %535 = vmatpush1.bf16.msra.mxu0 %v2013_v45  ;;  %576 = vmatpush1.bf16.msra.mxu1 %v2016_v46 }
  0x44   :  { %536 = vmatprep.subr.bf16.mxu0 %v2018_v47  ;;  %577 = vmatprep.subr.bf16.mxu1 %v2022_v48 }
  0x45   :  { %214 = vmatprep.mubr.bf16.mxu0 %v2534_v0  ;;  %287 = vmatprep.mubr.bf16.mxu1 %v2534_v0 }
  0x47   :  { %537 = vmatpush1.bf16.msra.mxu0 %v2025_v49  ;;  %578 = vmatpush1.bf16.msra.mxu1 %v2031_v51 }
  0x48   :  { %538 = vmatprep.subr.bf16.mxu0 %v2036_v53  ;;  %579 = vmatprep.subr.bf16.mxu1 %v2040_v54 }
  0x4a   :  { %1533 = vmatmul.mubr.msk.bf16.gmra.mrb[12].mxu0 %vm123_vm2, %v64_v56  ;;  %1537 = vmatmul.mubr.msk.bf16.gmra.mrb[12].mxu1 %vm123_vm2, %v64_v56 }
  0x4b   :  { %539 = vmatpush1.bf16.msra.mxu0 %v2046_v55  ;;  %580 = vmatpush1.bf16.msra.mxu1 %v2052_v57 }
  0x4c   :  { %540 = vmatprep.subr.bf16.mxu0 %v2054_v58  ;;  %581 = vmatprep.subr.bf16.mxu1 %v2057_v59 }
  0x4d   :  { %558 = vmatprep.mubr.bf16.mxu0 %v2534_v0  ;;  %599 = vmatprep.mubr.bf16.mxu1 %v2534_v0 }
  0x4f   :  { %541 = vmatpush1.bf16.msra.mxu0 %v2062_v60  ;;  %582 = vmatpush1.bf16.msra.mxu1 %v2066_v61 }
  0x50   :  { %635 = vmatprep.subr.bf16.mxu0 %v1943_v18  ;;  %676 = vmatprep.subr.bf16.mxu1 %v1945_v21 }
  0x52   :  { %559 = vmatmul.mubr.bf16.vlgmr.msra.gmra.mrb[16].mxu0 %v2534_v0  ;;  %600 = vmatmul.mubr.bf16.vlgmr.msra.gmra.mrb[16].mxu1 %v2534_v0 }
  0x53   :  { %636 = vmatpush1.bf16.msra.mxu0 %v1947_v23  ;;  %677 = vmatpush1.bf16.msra.mxu1 %v1950_v24 }
  0x54   :  { %637 = vmatprep.subr.bf16.mxu0 %v1952_v25  ;;  %678 = vmatprep.subr.bf16.mxu1 %v1954_v26 }
  0x55   :  { %667 = vmatprep.mubr.bf16.mxu0 %v2534_v0  ;;  %708 = vmatprep.mubr.bf16.mxu1 %v2534_v0 }
  0x57   :  { %638 = vmatpush1.bf16.msra.mxu0 %v1957_v27  ;;  %679 = vmatpush1.bf16.msra.mxu1 %v1960_v28 }
  0x58   :  { %639 = vmatprep.subr.bf16.mxu0 %v1972_v31  ;;  %680 = vmatprep.subr.bf16.mxu1 %v1976_v32 }
  0x5b   :  { %640 = vmatpush1.bf16.msra.mxu0 %v1979_v34  ;;  %681 = vmatpush1.bf16.msra.mxu1 %v1982_v35 }
  0x5c   :  { %641 = vmatprep.subr.bf16.mxu0 %v1986_v36  ;;  %682 = vmatprep.subr.bf16.mxu1 %v1989_v37 }
  0x5f   :  { %642 = vmatpush1.bf16.msra.mxu0 %v1992_v38  ;;  %683 = vmatpush1.bf16.msra.mxu1 %v2004_v41 }
  0x60   :  { %643 = vmatprep.subr.bf16.mxu0 %v2006_v42  ;;  %684 = vmatprep.subr.bf16.mxu1 %v2010_v43 }
  0x63   :  { %644 = vmatpush1.bf16.msra.mxu0 %v2013_v45  ;;  %685 = vmatpush1.bf16.msra.mxu1 %v2016_v46 }
  0x64   :  { %645 = vmatprep.subr.bf16.mxu0 %v2018_v47  ;;  %686 = vmatprep.subr.bf16.mxu1 %v2022_v48 }
  0x67   :  { %646 = vmatpush1.bf16.msra.mxu0 %v2025_v49  ;;  %687 = vmatpush1.bf16.msra.mxu1 %v2031_v51 }
  0x68   :  { %647 = vmatprep.subr.bf16.mxu0 %v2036_v53  ;;  %688 = vmatprep.subr.bf16.mxu1 %v2040_v54 }
  0x6b   :  { %648 = vmatpush1.bf16.msra.mxu0 %v2046_v55  ;;  %689 = vmatpush1.bf16.msra.mxu1 %v2052_v57 }
  0x6c   :  { %649 = vmatprep.subr.bf16.mxu0 %v2054_v58  ;;  %690 = vmatprep.subr.bf16.mxu1 %v2057_v59 }
  0x6f   :  { %650 = vmatpush1.bf16.msra.mxu0 %v2062_v60  ;;  %691 = vmatpush1.bf16.msra.mxu1 %v2066_v61 }
  0x70   :  { %744 = vmatprep.subr.bf16.mxu0 %v1943_v18  ;;  %785 = vmatprep.subr.bf16.mxu1 %v1945_v21 }
 0x105   :  { %v2114_v6 = vpop.f32.mrb[0].mxu0  ;;  %v259_v10 = vpop.f32.mrb[0].mxu1 }
 0x106   :  { %v188_v9 = vpop.f32.mrb[1].mxu0  ;;  %v261_v14 = vpop.f32.mrb[1].mxu1 }
 0x107   :  { %v190_v13 = vpop.f32.mrb[2].mxu0  ;;  %v263_v17 = vpop.f32.mrb[2].mxu1 }
 0x108   :  { %v2120_v15 = vadd.f32 %v190_v13, %v76_v8  ;;  %v192_v16 = vpop.f32.mrb[3].mxu0  ;;  %v2125_v20 = vadd.f32 %v263_v17, %v2116_v7  ;;  %v265_v22 = vpop.f32.mrb[3].mxu1 }
 0x109   :  { %v2122_v19 = vadd.f32 %v192_v16, %v80_v12  ;;  %v2128_v29 = vadd.f32 %v265_v22, %v2118_v11 }
 0x10d   :  { %v196_v30 = vpop.f32.mrb[4].mxu0  ;;  %v269_v40 = vpop.f32.mrb[4].mxu1 }
 0x10e   :  { %v2130_v33 = vadd.f32 %v196_v30, %v76_v8  ;;  %v198_v39 = vpop.f32.mrb[5].mxu0  ;;  %v2135_v52 = vadd.f32 %v269_v40, %v2116_v7  ;;  %v271_v56 = vpop.f32.mrb[5].mxu1 }
 0x10f   :  { %v2132_v44 = vadd.f32 %v198_v39, %v80_v12  ;;  %v200_v50 = vpop.f32.mrb[6].mxu0  ;;  %v2140_v1 = vadd.f32 %v271_v56, %v2118_v11  ;;  %v273_v2 = vpop.f32.mrb[6].mxu1 }
 0x110   :  { %v2137_v62 = vadd.f32 %v200_v50, %v76_v8  ;;  %v202_v63 = vpop.f32.mrb[7].mxu0  ;;  %v2145_v4 = vadd.f32 %v273_v2, %v2116_v7  ;;  %v275_v5 = vpop.f32.mrb[7].mxu1 }
 0x111   :  { %2536 = vst [vmem:[#allocation12_spill] sm:$0xff] %v2132_v44  ;;  %2538 = vst [vmem:[#allocation14_spill] sm:$0xff] %v2140_v1  ;;  %v2142_v3 = vadd.f32 %v202_v63, %v80_v12  ;;  %v2148_v13 = vadd.f32 %v275_v5, %v2118_v11 }
 0x112   :  { %2537 = vst [vmem:[#allocation13_spill] sm:$0xff] %v2137_v62  ;;  %2540 = vst [vmem:[#allocation16_spill] sm:$0xff] %v2145_v4 }
 0x113   :  { %2539 = vst [vmem:[#allocation15_spill] sm:$0xff] %v2142_v3  ;;  %2541 = vst [vmem:[#allocation17_spill] sm:$0xff] %v2148_v13 }
 0x115   :  { %v206_v16 = vpop.f32.mrb[8].mxu0  ;;  %v279_v30 = vpop.f32.mrb[8].mxu1 }
 0x116   :  { %v2150_v17 = vadd.f32 %v206_v16, %v76_v8  ;;  %v208_v22 = vpop.f32.mrb[9].mxu0  ;;  %v2155_v50 = vadd.f32 %v279_v30, %v2116_v7  ;;  %v281_v56 = vpop.f32.mrb[9].mxu1 }
 0x117   :  { %v2152_v39 = vadd.f32 %v208_v22, %v80_v12  ;;  %v210_v40 = vpop.f32.mrb[10].mxu0  ;;  %v2160_v0 = vadd.f32 %v281_v56, %v2118_v11  ;;  %v283_v5 = vpop.f32.mrb[10].mxu1 }
 0x118   :  { %2542 = vst [vmem:[#allocation18_spill] sm:$0xff] %v2150_v17  ;;  %2544 = vst [vmem:[#allocation20_spill] sm:$0xff] %v2155_v50  ;;  %v2157_v63 = vadd.f32 %v210_v40, %v76_v8  ;;  %v212_v2 = vpop.f32.mrb[11].mxu0  ;;  %v2165_v16 = vadd.f32 %v283_v5, %v2116_v7  ;;  %v285_v17 = vpop.f32.mrb[11].mxu1 }
 0x119   :  { %2543 = vst [vmem:[#allocation19_spill] sm:$0xff] %v2152_v39  ;;  %2546 = vst [vmem:[#allocation22_spill] sm:$0xff] %v2160_v0  ;;  %v2162_v13 = vadd.f32 %v212_v2, %v80_v12  ;;  %v2168_v22 = vadd.f32 %v285_v17, %v2118_v11 }
 0x11a   :  { %2545 = vst [vmem:[#allocation21_spill] sm:$0xff] %v2157_v63  ;;  %2548 = vst [vmem:[#allocation24_spill] sm:$0xff] %v2165_v16 }
 0x11b   :  { %2547 = vst [vmem:[#allocation23_spill] sm:$0xff] %v2162_v13  ;;  %2549 = vst [vmem:[#allocation25_spill] sm:$0xff] %v2168_v22 }
 0x11d   :  { %v216_v39 = vpop.f32.mrb[12].mxu0  ;;  %v289_v40 = vpop.f32.mrb[12].mxu1 }
 0x11e   :  { %v2170_v30 = vadd.f32 %v216_v39, %v76_v8  ;;  %v218_v50 = vpop.f32.mrb[13].mxu0  ;;  %v2175_v56 = vadd.f32 %v289_v40, %v2116_v7  ;;  %v291_v2 = vpop.f32.mrb[13].mxu1  ;;  %v187_v40 = vadd.f32 %v2114_v6, %v76_v8 }
 0x11f   :  { %v2172_v63 = vadd.f32 %v218_v50, %v80_v12  ;;  %v220_v3 = vpop.f32.mrb[14].mxu0  ;;  %v2180_v16 = vadd.f32 %v291_v2, %v2118_v11  ;;  %v293_v17 = vpop.f32.mrb[14].mxu1 }
 0x120   :  { %2550 = vst [vmem:[#allocation26_spill] sm:$0xff] %v2170_v30  ;;  %2552 = vst [vmem:[#allocation28_spill] sm:$0xff] %v2175_v56  ;;  %v2177_v13 = vadd.f32 %v220_v3, %v76_v8  ;;  %v222_v5 = vpop.f32.mrb[15].mxu0  ;;  %v2185_v39 = vadd.f32 %v293_v17, %v2116_v7  ;;  %v295_v30 = vpop.f32.mrb[15].mxu1  ;;  %v260_v3 = vadd.f32 %v259_v10, %v2116_v7 }
 0x121   :  { %2551 = vst [vmem:[#allocation27_spill] sm:$0xff] %v2172_v63  ;;  %2554 = vst [vmem:[#allocation30_spill] sm:$0xff] %v2180_v16  ;;  %v2182_v22 = vadd.f32 %v222_v5, %v80_v12  ;;  %v2188_v50 = vadd.f32 %v295_v30, %v2118_v11  ;;  %v189_v63 = vadd.f32 %v188_v9, %v80_v12 }
 0x122   :  { %2553 = vst [vmem:[#allocation29_spill] sm:$0xff] %v2177_v13  ;;  %2556 = vst [vmem:[#allocation32_spill] sm:$0xff] %v2185_v39  ;;  %v262_v56 = vadd.f32 %v261_v14, %v2118_v11 }
 0x123   :  { %2555 = vst [vmem:[#allocation31_spill] sm:$0xff] %v2182_v22  ;;  %2557 = vst [vmem:[#allocation33_spill] sm:$0xff] %v2188_v50 }
 0x125   :  { %v560_v13 = vpop.f32.mrb[16].mxu0  ;;  %v601_v16 = vpop.f32.mrb[16].mxu1 }
 0x126   :  { %v608_v2 = vadd.f32 %v560_v13, %v187_v40  ;;  %v562_v0 = vpop.f32.mrb[17].mxu0  ;;  %v610_v5 = vadd.f32 %v601_v16, %v260_v3  ;;  %v603_v4 = vpop.f32.mrb[17].mxu1 }
 0x127   :  { %v609_v22 = vadd.f32 %v562_v0, %v189_v63  ;;  %v564_v17 = vpop.f32.mrb[18].mxu0  ;;  %v611_v62 = vadd.f32 %v603_v4, %v262_v56  ;;  %v605_v30 = vpop.f32.mrb[18].mxu1  ;;  %v2558_v56 = vmov 0  }
 0x128   :  { %v612_v39 = vmul.f32 0.5, %v608_v2  ;;  %v565_v1 = vpop.f32.mrb[19].mxu0  ;;  %v606_v44 = vpop.f32.mrb[19].mxu1  ;;  %v614_v6 = vmul.f32 0.5, %v610_v5 }
 0x129   :  { %v613_v50 = vmul.f32 0.5, %v609_v22 }
 0x12a   :  { %1683 = vtanh.f32 %v612_v39 }
 0x12b   :  { %1685 = vtanh.f32 %v613_v50 }
 0x12c   :  { %1687 = vtanh.f32 %v611_v62 }
 0x12d   :  { %1689 = vtanh.f32 %v614_v6 }
 0x134   :  { %v1684_v7 = vpop.eup %1683 }
 0x135   :  { %v618_v8 = vmul.f32 0.5, %v1684_v7  ;;  %v1686_v9 = vpop.eup %1685 }
 0x136   :  { %v619_v11 = vmul.f32 0.5, %v1686_v9  ;;  %v1688_v12 = vpop.eup %1687 }
 0x137   :  { %v621_v10 = vadd.f32 0.5, %v618_v8  ;;  %v1690_v1 = vpop.eup %1689 }
 0x138   :  { %v622_v0 = vadd.f32 0.5, %v619_v11  ;;  %v620_v44 = vmul.f32 0.5, %v1690_v1 }
 0x139   :  { %v626_v14 = vmul.f32 %v1688_v12, %v621_v10 }
 0x13a   :  { %v625_v13 = vmul.f32 0.0, %v622_v0  ;;  %v623_v4 = vadd.f32 0.5, %v620_v44 }
 0x13c   :  { %v2193_v63 = vadd.f32 %v626_v14, %v625_v13 }
 0x13e   :  { %1691 = vtanh.f32 %v2193_v63 }
 0x148   :  { %v1692_v16 = vpop.eup %1691 }
 0x149   :  { %v629_v62 = vmul.f32 %v1692_v16, %v623_v4 }
 0x14b   :  { %v634_v22 = vpack.c.bf16 %v629_v62, %v629_v62 }
 0x14d   :  { %668 = vmatmul.mubr.bf16.vlgmr.msra.gmra.mrb[20].mxu0 %v634_v22  ;;  %709 = vmatmul.mubr.bf16.vlgmr.msra.gmra.mrb[20].mxu1 %v634_v22 }
 0x14e   :  { %745 = vmatpush1.bf16.msra.mxu0 %v1947_v23  ;;  %786 = vmatpush1.bf16.msra.mxu1 %v1950_v24 }
 0x14f   :  { %746 = vmatprep.subr.bf16.mxu0 %v1952_v25  ;;  %787 = vmatprep.subr.bf16.mxu1 %v1954_v26 }
 0x150   :  { %776 = vmatprep.mubr.bf16.mxu0 %v2558_v56  ;;  %817 = vmatprep.mubr.bf16.mxu1 %v2558_v56 }
 0x152   :  { %747 = vmatpush1.bf16.msra.mxu0 %v1957_v27  ;;  %788 = vmatpush1.bf16.msra.mxu1 %v1960_v28 }
 0x153   :  { %748 = vmatprep.subr.bf16.mxu0 %v1972_v31  ;;  %789 = vmatprep.subr.bf16.mxu1 %v1976_v32 }
 0x156   :  { %749 = vmatpush1.bf16.msra.mxu0 %v1979_v34  ;;  %790 = vmatpush1.bf16.msra.mxu1 %v1982_v35 }
 0x157   :  { %750 = vmatprep.subr.bf16.mxu0 %v1986_v36  ;;  %791 = vmatprep.subr.bf16.mxu1 %v1989_v37 }
 0x15a   :  { %751 = vmatpush1.bf16.msra.mxu0 %v1992_v38  ;;  %792 = vmatpush1.bf16.msra.mxu1 %v2004_v41 }
 0x15b   :  { %752 = vmatprep.subr.bf16.mxu0 %v2006_v42  ;;  %793 = vmatprep.subr.bf16.mxu1 %v2010_v43 }
 0x15e   :  { %753 = vmatpush1.bf16.msra.mxu0 %v2013_v45  ;;  %794 = vmatpush1.bf16.msra.mxu1 %v2016_v46 }
 0x15f   :  { %754 = vmatprep.subr.bf16.mxu0 %v2018_v47  ;;  %795 = vmatprep.subr.bf16.mxu1 %v2022_v48 }
 0x162   :  { %755 = vmatpush1.bf16.msra.mxu0 %v2025_v49  ;;  %796 = vmatpush1.bf16.msra.mxu1 %v2031_v51 }
 0x163   :  { %756 = vmatprep.subr.bf16.mxu0 %v2036_v53  ;;  %797 = vmatprep.subr.bf16.mxu1 %v2040_v54 }
 0x166   :  { %757 = vmatpush1.bf16.msra.mxu0 %v2046_v55  ;;  %798 = vmatpush1.bf16.msra.mxu1 %v2052_v57 }
 0x167   :  { %758 = vmatprep.subr.bf16.mxu0 %v2054_v58  ;;  %799 = vmatprep.subr.bf16.mxu1 %v2057_v59 }
 0x16a   :  { %759 = vmatpush1.bf16.msra.mxu0 %v2062_v60  ;;  %800 = vmatpush1.bf16.msra.mxu1 %v2066_v61 }
 0x16b   :  { %853 = vmatprep.subr.bf16.mxu0 %v1943_v18  ;;  %894 = vmatprep.subr.bf16.mxu1 %v1945_v21 }
 0x220   :  { %v669_v39 = vpop.f32.mrb[20].mxu0  ;;  %v710_v50 = vpop.f32.mrb[20].mxu1 }
 0x221   :  { %v717_v40 = vadd.f32 %v669_v39, %v2120_v15  ;;  %v719_v3 = vadd.f32 %v710_v50, %v2125_v20  ;;  %v671_v2 = vpop.f32.mrb[21].mxu0  ;;  %v712_v5 = vpop.f32.mrb[21].mxu1 }
 0x222   :  { %v718_v17 = vadd.f32 %v671_v2, %v2122_v19  ;;  %v720_v30 = vadd.f32 %v712_v5, %v2128_v29  ;;  %v673_v6 = vpop.f32.mrb[22].mxu0  ;;  %v714_v7 = vpop.f32.mrb[22].mxu1 }
 0x223   :  { %v721_v8 = vmul.f32 0.5, %v717_v40  ;;  %v674_v9 = vpop.f32.mrb[23].mxu0  ;;  %v715_v10 = vpop.f32.mrb[23].mxu1  ;;  %v723_v12 = vmul.f32 0.5, %v719_v3  ;;  %v2559_v6 = vld [vmem:[#allocation12_spill] sm:$0xff] }
 0x224   :  { %v722_v11 = vmul.f32 0.5, %v718_v17 }
 0x225   :  { %1693 = vtanh.f32 %v721_v8  ;;  %v2560_v8 = vld [vmem:[#allocation14_spill] sm:$0xff] }
 0x226   :  { %1695 = vtanh.f32 %v722_v11 }
 0x227   :  { %1697 = vtanh.f32 %v720_v30 }
 0x228   :  { %1699 = vtanh.f32 %v723_v12 }
 0x22f   :  { %v1694_v0 = vpop.eup %1693 }
 0x230   :  { %v727_v15 = vmul.f32 0.5, %v1694_v0  ;;  %v1696_v14 = vpop.eup %1695 }
 0x231   :  { %v728_v13 = vmul.f32 0.5, %v1696_v14  ;;  %v1698_v1 = vpop.eup %1697 }
 0x232   :  { %v730_v20 = vadd.f32 0.5, %v727_v15  ;;  %v1700_v16 = vpop.eup %1699 }
 0x233   :  { %v731_v19 = vadd.f32 0.5, %v728_v13  ;;  %v729_v62 = vmul.f32 0.5, %v1700_v16 }
 0x234   :  { %v735_v44 = vmul.f32 %v1698_v1, %v730_v20 }
 0x235   :  { %v734_v29 = vmul.f32 %v731_v19, %v2193_v63  ;;  %v732_v22 = vadd.f32 0.5, %v729_v62 }
 0x237   :  { %v2235_v4 = vadd.f32 %v735_v44, %v734_v29 }
 0x239   :  { %1701 = vtanh.f32 %v2235_v4 }
 0x243   :  { %v1702_v39 = vpop.eup %1701 }
 0x244   :  { %v738_v50 = vmul.f32 %v1702_v39, %v732_v22 }
 0x246   :  { %v743_v40 = vpack.c.bf16 %v738_v50, %v738_v50 }
 0x248   :  { %777 = vmatmul.mubr.bf16.vlgmr.msra.gmra.mrb[24].mxu0 %v743_v40  ;;  %818 = vmatmul.mubr.bf16.vlgmr.msra.gmra.mrb[24].mxu1 %v743_v40 }
 0x249   :  { %854 = vmatpush1.bf16.msra.mxu0 %v1947_v23  ;;  %895 = vmatpush1.bf16.msra.mxu1 %v1950_v24 }
 0x24a   :  { %855 = vmatprep.subr.bf16.mxu0 %v1952_v25  ;;  %896 = vmatprep.subr.bf16.mxu1 %v1954_v26 }
 0x24b   :  { %885 = vmatprep.mubr.bf16.mxu0 %v2558_v56  ;;  %926 = vmatprep.mubr.bf16.mxu1 %v2558_v56 }
 0x24d   :  { %856 = vmatpush1.bf16.msra.mxu0 %v1957_v27  ;;  %897 = vmatpush1.bf16.msra.mxu1 %v1960_v28 }
 0x24e   :  { %857 = vmatprep.subr.bf16.mxu0 %v1972_v31  ;;  %898 = vmatprep.subr.bf16.mxu1 %v1976_v32 }
 0x251   :  { %858 = vmatpush1.bf16.msra.mxu0 %v1979_v34  ;;  %899 = vmatpush1.bf16.msra.mxu1 %v1982_v35 }
 0x252   :  { %859 = vmatprep.subr.bf16.mxu0 %v1986_v36  ;;  %900 = vmatprep.subr.bf16.mxu1 %v1989_v37 }
 0x255   :  { %860 = vmatpush1.bf16.msra.mxu0 %v1992_v38  ;;  %901 = vmatpush1.bf16.msra.mxu1 %v2004_v41 }
 0x256   :  { %861 = vmatprep.subr.bf16.mxu0 %v2006_v42  ;;  %902 = vmatprep.subr.bf16.mxu1 %v2010_v43 }
 0x259   :  { %862 = vmatpush1.bf16.msra.mxu0 %v2013_v45  ;;  %903 = vmatpush1.bf16.msra.mxu1 %v2016_v46 }
 0x25a   :  { %863 = vmatprep.subr.bf16.mxu0 %v2018_v47  ;;  %904 = vmatprep.subr.bf16.mxu1 %v2022_v48 }
 0x25d   :  { %864 = vmatpush1.bf16.msra.mxu0 %v2025_v49  ;;  %905 = vmatpush1.bf16.msra.mxu1 %v2031_v51 }
 0x25e   :  { %865 = vmatprep.subr.bf16.mxu0 %v2036_v53  ;;  %906 = vmatprep.subr.bf16.mxu1 %v2040_v54 }
 0x261   :  { %866 = vmatpush1.bf16.msra.mxu0 %v2046_v55  ;;  %907 = vmatpush1.bf16.msra.mxu1 %v2052_v57 }
 0x262   :  { %867 = vmatprep.subr.bf16.mxu0 %v2054_v58  ;;  %908 = vmatprep.subr.bf16.mxu1 %v2057_v59 }
 0x265   :  { %868 = vmatpush1.bf16.msra.mxu0 %v2062_v60  ;;  %909 = vmatpush1.bf16.msra.mxu1 %v2066_v61 }
 0x266   :  { %962 = vmatprep.subr.bf16.mxu0 %v1943_v18  ;;  %1003 = vmatprep.subr.bf16.mxu1 %v1945_v21 }
 0x31b   :  { %v778_v63 = vpop.f32.mrb[24].mxu0  ;;  %v819_v3 = vpop.f32.mrb[24].mxu1 }
 0x31c   :  { %v826_v2 = vadd.f32 %v778_v63, %v2130_v33  ;;  %v828_v5 = vadd.f32 %v819_v3, %v2135_v52  ;;  %v780_v17 = vpop.f32.mrb[25].mxu0  ;;  %v821_v30 = vpop.f32.mrb[25].mxu1 }
 0x31d   :  { %v827_v7 = vadd.f32 %v780_v17, %v2559_v6  ;;  %v829_v9 = vadd.f32 %v821_v30, %v2560_v8  ;;  %v782_v10 = vpop.f32.mrb[26].mxu0  ;;  %v823_v11 = vpop.f32.mrb[26].mxu1  ;;  %v2561_v17 = vld [vmem:[#allocation13_spill] sm:$0xff]  ;;  %v2562_v6 = vld [vmem:[#allocation16_spill] sm:$0xff] }
 0x31e   :  { %v830_v12 = vmul.f32 0.5, %v826_v2  ;;  %v783_v0 = vpop.f32.mrb[27].mxu0  ;;  %v824_v15 = vpop.f32.mrb[27].mxu1  ;;  %v832_v20 = vmul.f32 0.5, %v828_v5  ;;  %v2563_v10 = vld [vmem:[#allocation15_spill] sm:$0xff] }
 0x31f   :  { %v831_v14 = vmul.f32 0.5, %v827_v7 }
 0x320   :  { %1703 = vtanh.f32 %v830_v12  ;;  %v2564_v12 = vld [vmem:[#allocation17_spill] sm:$0xff] }
 0x321   :  { %1705 = vtanh.f32 %v831_v14 }
 0x322   :  { %1707 = vtanh.f32 %v829_v9 }
 0x323   :  { %1709 = vtanh.f32 %v832_v20 }
 0x32a   :  { %v1704_v13 = vpop.eup %1703 }
 0x32b   :  { %v836_v33 = vmul.f32 0.5, %v1704_v13  ;;  %v1706_v1 = vpop.eup %1705 }
 0x32c   :  { %v837_v19 = vmul.f32 0.5, %v1706_v1  ;;  %v1708_v44 = vpop.eup %1707 }
 0x32d   :  { %v839_v52 = vadd.f32 0.5, %v836_v33  ;;  %v1710_v39 = vpop.eup %1709 }
 0x32e   :  { %v840_v29 = vadd.f32 0.5, %v837_v19  ;;  %v838_v50 = vmul.f32 0.5, %v1710_v39 }
 0x32f   :  { %v844_v16 = vmul.f32 %v1708_v44, %v839_v52 }
 0x330   :  { %v843_v62 = vmul.f32 %v840_v29, %v2235_v4  ;;  %v841_v40 = vadd.f32 0.5, %v838_v50 }
 0x332   :  { %v2277_v22 = vadd.f32 %v844_v16, %v843_v62 }
 0x334   :  { %1711 = vtanh.f32 %v2277_v22 }
 0x33e   :  { %v1712_v63 = vpop.eup %1711 }
 0x33f   :  { %v847_v3 = vmul.f32 %v1712_v63, %v841_v40 }
 0x341   :  { %v852_v2 = vpack.c.bf16 %v847_v3, %v847_v3 }
 0x343   :  { %886 = vmatmul.mubr.bf16.vlgmr.msra.gmra.mrb[28].mxu0 %v852_v2  ;;  %927 = vmatmul.mubr.bf16.vlgmr.msra.gmra.mrb[28].mxu1 %v852_v2 }
 0x344   :  { %963 = vmatpush1.bf16.msra.mxu0 %v1947_v23  ;;  %1004 = vmatpush1.bf16.msra.mxu1 %v1950_v24 }
 0x345   :  { %964 = vmatprep.subr.bf16.mxu0 %v1952_v25  ;;  %1005 = vmatprep.subr.bf16.mxu1 %v1954_v26 }
 0x346   :  { %994 = vmatprep.mubr.bf16.mxu0 %v2558_v56  ;;  %1035 = vmatprep.mubr.bf16.mxu1 %v2558_v56 }
 0x348   :  { %965 = vmatpush1.bf16.msra.mxu0 %v1957_v27  ;;  %1006 = vmatpush1.bf16.msra.mxu1 %v1960_v28 }
 0x349   :  { %966 = vmatprep.subr.bf16.mxu0 %v1972_v31  ;;  %1007 = vmatprep.subr.bf16.mxu1 %v1976_v32 }
 0x34c   :  { %967 = vmatpush1.bf16.msra.mxu0 %v1979_v34  ;;  %1008 = vmatpush1.bf16.msra.mxu1 %v1982_v35 }
 0x34d   :  { %968 = vmatprep.subr.bf16.mxu0 %v1986_v36  ;;  %1009 = vmatprep.subr.bf16.mxu1 %v1989_v37 }
 0x350   :  { %969 = vmatpush1.bf16.msra.mxu0 %v1992_v38  ;;  %1010 = vmatpush1.bf16.msra.mxu1 %v2004_v41 }
 0x351   :  { %970 = vmatprep.subr.bf16.mxu0 %v2006_v42  ;;  %1011 = vmatprep.subr.bf16.mxu1 %v2010_v43 }
 0x354   :  { %971 = vmatpush1.bf16.msra.mxu0 %v2013_v45  ;;  %1012 = vmatpush1.bf16.msra.mxu1 %v2016_v46 }
 0x355   :  { %972 = vmatprep.subr.bf16.mxu0 %v2018_v47  ;;  %1013 = vmatprep.subr.bf16.mxu1 %v2022_v48 }
 0x358   :  { %973 = vmatpush1.bf16.msra.mxu0 %v2025_v49  ;;  %1014 = vmatpush1.bf16.msra.mxu1 %v2031_v51 }
 0x359   :  { %974 = vmatprep.subr.bf16.mxu0 %v2036_v53  ;;  %1015 = vmatprep.subr.bf16.mxu1 %v2040_v54 }
 0x35c   :  { %975 = vmatpush1.bf16.msra.mxu0 %v2046_v55  ;;  %1016 = vmatpush1.bf16.msra.mxu1 %v2052_v57 }
 0x35d   :  { %976 = vmatprep.subr.bf16.mxu0 %v2054_v58  ;;  %1017 = vmatprep.subr.bf16.mxu1 %v2057_v59 }
 0x360   :  { %977 = vmatpush1.bf16.msra.mxu0 %v2062_v60  ;;  %1018 = vmatpush1.bf16.msra.mxu1 %v2066_v61 }
 0x361   :  { %1071 = vmatprep.subr.bf16.mxu0 %v1943_v18  ;;  %1112 = vmatprep.subr.bf16.mxu1 %v1945_v21 }
 0x416   :  { %v887_v4 = vpop.f32.mrb[28].mxu0  ;;  %v928_v5 = vpop.f32.mrb[28].mxu1 }
 0x417   :  { %v935_v30 = vadd.f32 %v887_v4, %v2561_v17  ;;  %v937_v7 = vadd.f32 %v928_v5, %v2562_v6  ;;  %v889_v8 = vpop.f32.mrb[29].mxu0  ;;  %v930_v9 = vpop.f32.mrb[29].mxu1 }
 0x418   :  { %v936_v11 = vadd.f32 %v889_v8, %v2563_v10  ;;  %v938_v0 = vadd.f32 %v930_v9, %v2564_v12  ;;  %v891_v15 = vpop.f32.mrb[30].mxu0  ;;  %v932_v14 = vpop.f32.mrb[30].mxu1 }
 0x419   :  { %v939_v20 = vmul.f32 0.5, %v935_v30  ;;  %v892_v13 = vpop.f32.mrb[31].mxu0  ;;  %v933_v33 = vpop.f32.mrb[31].mxu1  ;;  %v941_v21 = vmul.f32 0.5, %v937_v7 }
 0x41a   :  { %v940_v18 = vmul.f32 0.5, %v936_v11 }
 0x41b   :  { %1713 = vtanh.f32 %v939_v20 }
 0x41c   :  { %1715 = vtanh.f32 %v940_v18 }
 0x41d   :  { %1717 = vtanh.f32 %v938_v0 }
 0x41e   :  { %1719 = vtanh.f32 %v941_v21  ;;  %v2368_v21 = vld [vmem:[#allocation6] ss:$16 sps:$4 sm:$0xff]  }
 0x425   :  { %v1714_v1 = vpop.eup %1713 }
 0x426   :  { %v945_v52 = vmul.f32 0.5, %v1714_v1  ;;  %v1716_v19 = vpop.eup %1715  ;;  %v2371_v1 = vld [vmem:[#allocation6 + $0x8] ss:$16 sps:$4 sm:$0xff]  }
 0x427   :  { %v946_v29 = vmul.f32 0.5, %v1716_v19  ;;  %v1718_v16 = vpop.eup %1717  ;;  %v2377_v19 = vld [vmem:[#allocation6 + $0x2c] ss:$16 sps:$4 sm:$0xff]  }
 0x428   :  { %v948_v44 = vadd.f32 0.5, %v945_v52  ;;  %v1720_v63 = vpop.eup %1719  ;;  %v2374_v52 = vld [vmem:[#allocation6 + $0x24] ss:$16 sps:$4 sm:$0xff]  }
 0x429   :  { %v949_v62 = vadd.f32 0.5, %v946_v29  ;;  %v947_v3 = vmul.f32 0.5, %v1720_v63  ;;  %v2385_v29 = vld [vmem:[#allocation6 + $0x28] ss:$16 sps:$4 sm:$0xff]   ;;  %v2403_v63 = vld [vmem:[#allocation6 + $0x6c] ss:$16 sps:$4 sm:$0xff]  }
 0x42a   :  { %v953_v39 = vmul.f32 %v1718_v16, %v948_v44  ;;  %v2382_v44 = vld [vmem:[#allocation6 + $0x20] ss:$16 sps:$4 sm:$0xff]   ;;  %v2388_v16 = vld [vmem:[#allocation6 + $0x44] ss:$16 sps:$4 sm:$0xff]  }
 0x42b   :  { %v952_v50 = vmul.f32 %v949_v62, %v2277_v22  ;;  %v950_v2 = vadd.f32 0.5, %v947_v3  ;;  %v2391_v62 = vld [vmem:[#allocation6 + $0x4c] ss:$16 sps:$4 sm:$0xff]   ;;  %v2406_v3 = vld [vmem:[#allocation6 + $0x60] ss:$16 sps:$4 sm:$0xff]  }
 0x42d   :  { %v2319_v40 = vadd.f32 %v953_v39, %v952_v50  ;;  %v2394_v39 = vld [vmem:[#allocation6 + $0x40] ss:$16 sps:$4 sm:$0xff]   ;;  %v2397_v50 = vld [vmem:[#allocation6 + $0x48] ss:$16 sps:$4 sm:$0xff]  }
 0x42f   :  { %1721 = vtanh.f32 %v2319_v40 }
 0x439   :  { %v1722_v4 = vpop.eup %1721 }
 0x43a   :  { %v956_v5 = vmul.f32 %v1722_v4, %v950_v2  ;;  %v2409_v2 = vld [vmem:[#allocation6 + $0x68] ss:$16 sps:$4 sm:$0xff]   ;;  %v2412_v4 = vld [vmem:[#allocation6 + $0x84] ss:$16 sps:$4 sm:$0xff]  }
 0x43c   :  { %v961_v17 = vpack.c.bf16 %v956_v5, %v956_v5  ;;  %v2415_v5 = vld [vmem:[#allocation6 + $0x8c] ss:$16 sps:$4 sm:$0xff]  }
 0x43e   :  { %995 = vmatmul.mubr.bf16.vlgmr.msra.gmra.mrb[32].mxu0 %v961_v17  ;;  %1036 = vmatmul.mubr.bf16.vlgmr.msra.gmra.mrb[32].mxu1 %v961_v17  ;;  %v2418_v17 = vld [vmem:[#allocation6 + $0x80] ss:$16 sps:$4 sm:$0xff]  }
 0x43f   :  { %1072 = vmatpush1.bf16.msra.mxu0 %v1947_v23  ;;  %1113 = vmatpush1.bf16.msra.mxu1 %v1950_v24  ;;  %v2354_v23 = vld [vmem:[#allocation6 + $0x4] ss:$16 sps:$4 sm:$0xff]   ;;  %v2357_v24 = vld [vmem:[#allocation6 + $0xc] ss:$16 sps:$4 sm:$0xff]  }
 0x440   :  { %1073 = vmatprep.subr.bf16.mxu0 %v1952_v25  ;;  %1114 = vmatprep.subr.bf16.mxu1 %v1954_v26 }
 0x441   :  { %1103 = vmatprep.mubr.bf16.mxu0 %v2558_v56  ;;  %1144 = vmatprep.mubr.bf16.mxu1 %v2558_v56 }
 0x443   :  { %1074 = vmatpush1.bf16.msra.mxu0 %v1957_v27  ;;  %1115 = vmatpush1.bf16.msra.mxu1 %v1960_v28  ;;  %v2565_v27 = vld [vmem:[#allocation18_spill] sm:$0xff] }
 0x444   :  { %1075 = vmatprep.subr.bf16.mxu0 %v1972_v31  ;;  %1116 = vmatprep.subr.bf16.mxu1 %v1976_v32  ;;  %v2566_v31 = vld [vmem:[#allocation20_spill] sm:$0xff] }
 0x447   :  { %1076 = vmatpush1.bf16.msra.mxu0 %v1979_v34  ;;  %1117 = vmatpush1.bf16.msra.mxu1 %v1982_v35 }
 0x448   :  { %1077 = vmatprep.subr.bf16.mxu0 %v1986_v36  ;;  %1118 = vmatprep.subr.bf16.mxu1 %v1989_v37  ;;  %v2567_v36 = vld [vmem:[#allocation19_spill] sm:$0xff] }
 0x44b   :  { %1078 = vmatpush1.bf16.msra.mxu0 %v1992_v38  ;;  %1119 = vmatpush1.bf16.msra.mxu1 %v2004_v41  ;;  %v2568_v38 = vld [vmem:[#allocation22_spill] sm:$0xff] }
 0x44c   :  { %1079 = vmatprep.subr.bf16.mxu0 %v2006_v42  ;;  %1120 = vmatprep.subr.bf16.mxu1 %v2010_v43 }
 0x44f   :  { %1080 = vmatpush1.bf16.msra.mxu0 %v2013_v45  ;;  %1121 = vmatpush1.bf16.msra.mxu1 %v2016_v46 }
 0x450   :  { %1081 = vmatprep.subr.bf16.mxu0 %v2018_v47  ;;  %1122 = vmatprep.subr.bf16.mxu1 %v2022_v48 }
 0x453   :  { %1082 = vmatpush1.bf16.msra.mxu0 %v2025_v49  ;;  %1123 = vmatpush1.bf16.msra.mxu1 %v2031_v51 }
 0x454   :  { %1083 = vmatprep.subr.bf16.mxu0 %v2036_v53  ;;  %1124 = vmatprep.subr.bf16.mxu1 %v2040_v54 }
 0x457   :  { %1084 = vmatpush1.bf16.msra.mxu0 %v2046_v55  ;;  %1125 = vmatpush1.bf16.msra.mxu1 %v2052_v57 }
 0x458   :  { %1085 = vmatprep.subr.bf16.mxu0 %v2054_v58  ;;  %1126 = vmatprep.subr.bf16.mxu1 %v2057_v59 }
 0x45b   :  { %1086 = vmatpush1.bf16.msra.mxu0 %v2062_v60  ;;  %1127 = vmatpush1.bf16.msra.mxu1 %v2066_v61 }
 0x45c   :  { %1180 = vmatprep.subr.bf16.mxu0 %v2354_v23  ;;  %1221 = vmatprep.subr.bf16.mxu1 %v2357_v24 }
 0x511   :  { %v996_v25 = vpop.f32.mrb[32].mxu0  ;;  %v1037_v26 = vpop.f32.mrb[32].mxu1 }
 0x512   :  { %v1044_v28 = vadd.f32 %v996_v25, %v2565_v27  ;;  %v1046_v32 = vadd.f32 %v1037_v26, %v2566_v31  ;;  %v998_v34 = vpop.f32.mrb[33].mxu0  ;;  %v1039_v35 = vpop.f32.mrb[33].mxu1  ;;  %v2421_v25 = vld [vmem:[#allocation6 + $0x88] ss:$16 sps:$4 sm:$0xff]   ;;  %v2424_v26 = vld [vmem:[#allocation6 + $0xa4] ss:$16 sps:$4 sm:$0xff]  }
 0x513   :  { %v1045_v37 = vadd.f32 %v998_v34, %v2567_v36  ;;  %v1047_v41 = vadd.f32 %v1039_v35, %v2568_v38  ;;  %v1000_v42 = vpop.f32.mrb[34].mxu0  ;;  %v1041_v43 = vpop.f32.mrb[34].mxu1  ;;  %v2427_v27 = vld [vmem:[#allocation6 + $0xac] ss:$16 sps:$4 sm:$0xff]   ;;  %v2569_v31 = vld [vmem:[#allocation21_spill] sm:$0xff]  ;;  %v2571_v35 = vld [vmem:[#allocation23_spill] sm:$0xff] }
 0x514   :  { %v1048_v45 = vmul.f32 0.5, %v1044_v28  ;;  %v1001_v46 = vpop.f32.mrb[35].mxu0  ;;  %v1042_v47 = vpop.f32.mrb[35].mxu1  ;;  %v1050_v49 = vmul.f32 0.5, %v1046_v32  ;;  %v2430_v28 = vld [vmem:[#allocation6 + $0xa0] ss:$16 sps:$4 sm:$0xff]  }
 0x515   :  { %v1049_v48 = vmul.f32 0.5, %v1045_v37  ;;  %v2570_v32 = vld [vmem:[#allocation24_spill] sm:$0xff]  ;;  %v2572_v36 = vld [vmem:[#allocation25_spill] sm:$0xff] }
 0x516   :  { %1723 = vtanh.f32 %v1048_v45 }
 0x517   :  { %1725 = vtanh.f32 %v1049_v48 }
 0x518   :  { %1727 = vtanh.f32 %v1047_v41 }
 0x519   :  { %1729 = vtanh.f32 %v1050_v49 }
 0x520   :  { %v1724_v22 = vpop.eup %1723 }
 0x521   :  { %v1054_v30 = vmul.f32 0.5, %v1724_v22  ;;  %v1726_v6 = vpop.eup %1725 }
 0x522   :  { %v1055_v8 = vmul.f32 0.5, %v1726_v6  ;;  %v1728_v9 = vpop.eup %1727 }
 0x523   :  { %v1057_v7 = vadd.f32 0.5, %v1054_v30  ;;  %v1730_v15 = vpop.eup %1729 }
 0x524   :  { %v1058_v10 = vadd.f32 0.5, %v1055_v8  ;;  %v1056_v14 = vmul.f32 0.5, %v1730_v15  ;;  %v1788_v15 = vld [vmem:[#allocation6 + $0xcc] ss:$16 sps:$4 sm:$0xff]  }
 0x525   :  { %v1062_v11 = vmul.f32 %v1728_v9, %v1057_v7 }
 0x526   :  { %v1061_v12 = vmul.f32 %v1058_v10, %v2319_v40  ;;  %v1059_v20 = vadd.f32 0.5, %v1056_v14  ;;  %v2400_v40 = vld [vmem:[#allocation6 + $0x64] ss:$16 sps:$4 sm:$0xff]   ;;  %v1789_v14 = vld [vmem:[#allocation6 + $0xc0] ss:$16 sps:$4 sm:$0xff]  }
 0x528   :  { %v2365_v0 = vadd.f32 %v1062_v11, %v1061_v12 }
 0x52a   :  { %1731 = vtanh.f32 %v2365_v0 }
 0x534   :  { %v1732_v13 = vpop.eup %1731 }
 0x535   :  { %v1065_v33 = vmul.f32 %v1732_v13, %v1059_v20  ;;  %v1790_v20 = vld [vmem:[#allocation6 + $0xc8] ss:$16 sps:$4 sm:$0xff]   ;;  %v1791_v13 = vld [vmem:[#allocation6 + $0xe4] ss:$16 sps:$4 sm:$0xff]  }
 0x537   :  { %v1070_v18 = vpack.c.bf16 %v1065_v33, %v1065_v33  ;;  %v1792_v33 = vld [vmem:[#allocation6 + $0xec] ss:$16 sps:$4 sm:$0xff]  }
 0x539   :  { %1104 = vmatmul.mubr.bf16.vlgmr.msra.gmra.mrb[36].mxu0 %v1070_v18  ;;  %1145 = vmatmul.mubr.bf16.vlgmr.msra.gmra.mrb[36].mxu1 %v1070_v18  ;;  %v1793_v18 = vld [vmem:[#allocation6 + $0xe0] ss:$16 sps:$4 sm:$0xff]  }
 0x53a   :  { %1181 = vmatpush1.bf16.msra.mxu0 %v2368_v21  ;;  %1222 = vmatpush1.bf16.msra.mxu1 %v2371_v1 }
 0x53b   :  { %1182 = vmatprep.subr.bf16.mxu0 %v2374_v52  ;;  %1223 = vmatprep.subr.bf16.mxu1 %v2377_v19 }
 0x53c   :  { %1212 = vmatprep.mubr.bf16.mxu0 %v2558_v56  ;;  %1253 = vmatprep.mubr.bf16.mxu1 %v2558_v56 }
 0x53e   :  { %1183 = vmatpush1.bf16.msra.mxu0 %v2382_v44  ;;  %1224 = vmatpush1.bf16.msra.mxu1 %v2385_v29 }
 0x53f   :  { %1184 = vmatprep.subr.bf16.mxu0 %v2388_v16  ;;  %1225 = vmatprep.subr.bf16.mxu1 %v2391_v62 }
 0x542   :  { %1185 = vmatpush1.bf16.msra.mxu0 %v2394_v39  ;;  %1226 = vmatpush1.bf16.msra.mxu1 %v2397_v50 }
 0x543   :  { %1186 = vmatprep.subr.bf16.mxu0 %v2400_v40  ;;  %1227 = vmatprep.subr.bf16.mxu1 %v2403_v63 }
 0x546   :  { %1187 = vmatpush1.bf16.msra.mxu0 %v2406_v3  ;;  %1228 = vmatpush1.bf16.msra.mxu1 %v2409_v2 }
 0x547   :  { %1188 = vmatprep.subr.bf16.mxu0 %v2412_v4  ;;  %1229 = vmatprep.subr.bf16.mxu1 %v2415_v5 }
 0x54a   :  { %1189 = vmatpush1.bf16.msra.mxu0 %v2418_v17  ;;  %1230 = vmatpush1.bf16.msra.mxu1 %v2421_v25 }
 0x54b   :  { %1190 = vmatprep.subr.bf16.mxu0 %v2424_v26  ;;  %1231 = vmatprep.subr.bf16.mxu1 %v2427_v27 }
 0x54e   :  { %1191 = vmatpush1.bf16.msra.mxu0 %v2430_v28  ;;  %1232 = vmatpush1.bf16.msra.mxu1 %v2031_v51 }
 0x54f   :  { %1192 = vmatprep.subr.bf16.mxu0 %v2036_v53  ;;  %1233 = vmatprep.subr.bf16.mxu1 %v2040_v54 }
 0x552   :  { %1193 = vmatpush1.bf16.msra.mxu0 %v2046_v55  ;;  %1234 = vmatpush1.bf16.msra.mxu1 %v2052_v57 }
 0x553   :  { %1194 = vmatprep.subr.bf16.mxu0 %v2054_v58  ;;  %1235 = vmatprep.subr.bf16.mxu1 %v2057_v59 }
 0x556   :  { %1195 = vmatpush1.bf16.msra.mxu0 %v2062_v60  ;;  %1236 = vmatpush1.bf16.msra.mxu1 %v2066_v61 }
 0x557   :  { %1289 = vmatprep.subr.bf16.mxu0 %v2354_v23  ;;  %1330 = vmatprep.subr.bf16.mxu1 %v2357_v24 }
 0x60c   :  { %v1105_v51 = vpop.f32.mrb[36].mxu0  ;;  %v1146_v53 = vpop.f32.mrb[36].mxu1 }
 0x60d   :  { %v1153_v54 = vadd.f32 %v1105_v51, %v2569_v31  ;;  %v1155_v55 = vadd.f32 %v1146_v53, %v2570_v32  ;;  %v1107_v34 = vpop.f32.mrb[37].mxu0  ;;  %v1148_v57 = vpop.f32.mrb[37].mxu1 }
 0x60e   :  { %v1154_v58 = vadd.f32 %v1107_v34, %v2571_v35  ;;  %v1156_v59 = vadd.f32 %v1148_v57, %v2572_v36  ;;  %v1109_v37 = vpop.f32.mrb[38].mxu0  ;;  %v1150_v60 = vpop.f32.mrb[38].mxu1 }
 0x60f   :  { %v1157_v38 = vmul.f32 0.5, %v1153_v54  ;;  %v1110_v61 = vpop.f32.mrb[39].mxu0  ;;  %v1151_v41 = vpop.f32.mrb[39].mxu1  ;;  %v1159_v24 = vmul.f32 0.5, %v1155_v55 }
 0x610   :  { %v1158_v23 = vmul.f32 0.5, %v1154_v58  ;;  %v1675_v61 = vld [vmem:[%s2531_s4] sm:$0xff]   ;;  %v1873_v41 = vmov 0.0  }
 0x611   :  { %1733 = vtanh.f32 %v1157_v38 }
 0x612   :  { %1735 = vtanh.f32 %v1158_v23  ;;  %v1676_v23 = vld [vmem:[%s2531_s4 + $0x8] sm:$0xff]  }
 0x613   :  { %1737 = vtanh.f32 %v1156_v59 }
 0x614   :  { %1739 = vtanh.f32 %v1159_v24  ;;  %v1677_v24 = vld [vmem:[%s2531_s4 + $0x10] sm:$0xff]  }
 0x61b   :  { %v1734_v42 = vpop.eup %1733 }
 0x61c   :  { %v1163_v43 = vmul.f32 0.5, %v1734_v42  ;;  %v1736_v45 = vpop.eup %1735  ;;  %v1678_v42 = vld [vmem:[%s2531_s4 + $0x18] sm:$0xff]  }
 0x61d   :  { %v1164_v47 = vmul.f32 0.5, %v1736_v45  ;;  %v1738_v48 = vpop.eup %1737  ;;  %v1680_v45 = vld [vmem:[%s2531_s4 + $0x28] sm:$0xff]  }
 0x61e   :  { %v1166_v46 = vadd.f32 0.5, %v1163_v43  ;;  %v1740_v7 = vpop.eup %1739  ;;  %v1679_v43 = vld [vmem:[%s2531_s4 + $0x20] sm:$0xff]  }
 0x61f   :  { %v1167_v49 = vadd.f32 0.5, %v1164_v47  ;;  %v1165_v8 = vmul.f32 0.5, %v1740_v7  ;;  %v1682_v47 = vld [vmem:[%s2531_s4 + $0x38] sm:$0xff]  }
 0x620   :  { %v1171_v22 = vmul.f32 %v1738_v48, %v1166_v46  ;;  %v1681_v46 = vld [vmem:[%s2531_s4 + $0x30] sm:$0xff]  }
 0x621   :  { %v1170_v30 = vmul.f32 %v1167_v49, %v2365_v0  ;;  %v1168_v9 = vadd.f32 0.5, %v1165_v8  ;;  %v1787_v0 = vld [vmem:[#allocation6 + $0xc4] ss:$16 sps:$4 sm:$0xff]  }
 0x623   :  { %v2449_v6 = vadd.f32 %v1171_v22, %v1170_v30  ;;  %v2577_v22 = vld [vmem:[#allocation29_spill] sm:$0xff] }
 0x625   :  { %1741 = vtanh.f32 %v2449_v6 }
 0x62f   :  { %v1742_v10 = vpop.eup %1741 }
 0x630   :  { %v1174_v11 = vmul.f32 %v1742_v10, %v1168_v9  ;;  %v2579_v10 = vld [vmem:[#allocation31_spill] sm:$0xff] }
 0x632   :  { %v1179_v12 = vpack.c.bf16 %v1174_v11, %v1174_v11 }
 0x634   :  { %1213 = vmatmul.mubr.bf16.vlgmr.msra.gmra.mrb[40].mxu0 %v1179_v12  ;;  %1254 = vmatmul.mubr.bf16.vlgmr.msra.gmra.mrb[40].mxu1 %v1179_v12  ;;  %v2580_v12 = vld [vmem:[#allocation33_spill] sm:$0xff] }
 0x635   :  { %1290 = vmatpush1.bf16.msra.mxu0 %v2368_v21  ;;  %1331 = vmatpush1.bf16.msra.mxu1 %v2371_v1  ;;  %v1794_v21 = vld [vmem:[#allocation6 + $0xe8] ss:$16 sps:$4 sm:$0xff]  }
 0x636   :  { %1291 = vmatprep.subr.bf16.mxu0 %v2374_v52  ;;  %1332 = vmatprep.subr.bf16.mxu1 %v2377_v19  ;;  %v2573_v19 = vld [vmem:[#allocation26_spill] sm:$0xff] }
 0x637   :  { %1321 = vmatprep.mubr.bf16.mxu0 %v2558_v56  ;;  %1362 = vmatprep.mubr.bf16.mxu1 %v2558_v56  ;;  %v1786_v56 = vld [vmem:[#allocation6 + $0xa8] ss:$16 sps:$4 sm:$0xff]  }
 0x639   :  { %1292 = vmatpush1.bf16.msra.mxu0 %v2382_v44  ;;  %1333 = vmatpush1.bf16.msra.mxu1 %v2385_v29  ;;  %v2574_v29 = vld [vmem:[#allocation28_spill] sm:$0xff] }
 0x63a   :  { %1293 = vmatprep.subr.bf16.mxu0 %v2388_v16  ;;  %1334 = vmatprep.subr.bf16.mxu1 %v2391_v62 }
 0x63d   :  { %1294 = vmatpush1.bf16.msra.mxu0 %v2394_v39  ;;  %1335 = vmatpush1.bf16.msra.mxu1 %v2397_v50  ;;  %v2575_v50 = vld [vmem:[#allocation27_spill] sm:$0xff] }
 0x63e   :  { %1295 = vmatprep.subr.bf16.mxu0 %v2400_v40  ;;  %1336 = vmatprep.subr.bf16.mxu1 %v2403_v63  ;;  %v2576_v63 = vld [vmem:[#allocation30_spill] sm:$0xff] }
 0x641   :  { %1296 = vmatpush1.bf16.msra.mxu0 %v2406_v3  ;;  %1337 = vmatpush1.bf16.msra.mxu1 %v2409_v2 }
 0x642   :  { %1297 = vmatprep.subr.bf16.mxu0 %v2412_v4  ;;  %1338 = vmatprep.subr.bf16.mxu1 %v2415_v5 }
 0x645   :  { %1298 = vmatpush1.bf16.msra.mxu0 %v2418_v17  ;;  %1339 = vmatpush1.bf16.msra.mxu1 %v2421_v25 }
 0x646   :  { %1299 = vmatprep.subr.bf16.mxu0 %v2424_v26  ;;  %1340 = vmatprep.subr.bf16.mxu1 %v2427_v27 }
 0x649   :  { %1300 = vmatpush1.bf16.msra.mxu0 %v2430_v28  ;;  %1341 = vmatpush1.bf16.msra.mxu1 %v1786_v56 }
 0x64a   :  { %1301 = vmatprep.subr.bf16.mxu0 %v1787_v0  ;;  %1342 = vmatprep.subr.bf16.mxu1 %v1788_v15 }
 0x64d   :  { %1302 = vmatpush1.bf16.msra.mxu0 %v1789_v14  ;;  %1343 = vmatpush1.bf16.msra.mxu1 %v1790_v20 }
 0x64e   :  { %1303 = vmatprep.subr.bf16.mxu0 %v1791_v13  ;;  %1344 = vmatprep.subr.bf16.mxu1 %v1792_v33 }
 0x651   :  { %1304 = vmatpush1.bf16.msra.mxu0 %v1793_v18  ;;  %1345 = vmatpush1.bf16.msra.mxu1 %v1794_v21 }
 0x652   :  { %1588 = vmatprep.subr.bf16.mxu0 %v1873_v41 }
 0x707   :  { %v1214_v1 = vpop.f32.mrb[40].mxu0  ;;  %v1255_v52 = vpop.f32.mrb[40].mxu1 }
 0x708   :  { %v1262_v44 = vadd.f32 %v1214_v1, %v2573_v19  ;;  %v1264_v16 = vadd.f32 %v1255_v52, %v2574_v29  ;;  %v1216_v62 = vpop.f32.mrb[41].mxu0  ;;  %v1257_v39 = vpop.f32.mrb[41].mxu1 }
 0x709   :  { %v1263_v40 = vadd.f32 %v1216_v62, %v2575_v50  ;;  %v1265_v3 = vadd.f32 %v1257_v39, %v2576_v63  ;;  %v1218_v2 = vpop.f32.mrb[42].mxu0  ;;  %v1259_v4 = vpop.f32.mrb[42].mxu1 }
 0x70a   :  { %v1266_v5 = vmul.f32 0.5, %v1262_v44  ;;  %v1219_v17 = vpop.f32.mrb[43].mxu0  ;;  %v1260_v25 = vpop.f32.mrb[43].mxu1  ;;  %v1268_v27 = vmul.f32 0.5, %v1264_v16 }
 0x70b   :  { %v1267_v26 = vmul.f32 0.5, %v1263_v40  ;;  %v1570_v17 = vld [vmem:[%s2532_s5] ss:$0 sm:$0xff] }
 0x70c   :  { %1743 = vtanh.f32 %v1266_v5 }
 0x70d   :  { %1745 = vtanh.f32 %v1267_v26 }
 0x70e   :  { %1747 = vtanh.f32 %v1265_v3 }
 0x70f   :  { %1749 = vtanh.f32 %v1268_v27 }
 0x716   :  { %v1744_v28 = vpop.eup %1743 }
 0x717   :  { %v1272_v51 = vmul.f32 0.5, %v1744_v28  ;;  %v1746_v53 = vpop.eup %1745 }
 0x718   :  { %v1273_v54 = vmul.f32 0.5, %v1746_v53  ;;  %v1748_v32 = vpop.eup %1747 }
 0x719   :  { %v1275_v31 = vadd.f32 0.5, %v1272_v51  ;;  %v1750_v58 = vpop.eup %1749 }
 0x71a   :  { %v1276_v55 = vadd.f32 0.5, %v1273_v54  ;;  %v1274_v36 = vmul.f32 0.5, %v1750_v58 }
 0x71b   :  { %v1280_v34 = vmul.f32 %v1748_v32, %v1275_v31 }
 0x71c   :  { %v1279_v57 = vmul.f32 %v1276_v55, %v2449_v6  ;;  %v1277_v59 = vadd.f32 0.5, %v1274_v36  ;;  %v2578_v6 = vld [vmem:[#allocation32_spill] sm:$0xff] }
 0x71e   :  { %v2480_v35 = vadd.f32 %v1280_v34, %v1279_v57 }
 0x720   :  { %1751 = vtanh.f32 %v2480_v35 }
 0x72a   :  { %v1752_v37 = vpop.eup %1751 }
 0x72b   :  { %v1283_v60 = vmul.f32 %v1752_v37, %v1277_v59 }
 0x72d   :  { %v1288_v38 = vpack.c.bf16 %v1283_v60, %v1283_v60 }
 0x72f   :  { %1322 = vmatmul.mubr.bf16.vlgmr.msra.gmra.mrb[44].mxu0 %v1288_v38  ;;  %1363 = vmatmul.mubr.bf16.vlgmr.msra.gmra.mrb[44].mxu1 %v1288_v38 }
 0x730   :  { %1589 = vmatpush3.bf16.msra.mxu0 %v1675_v61  ;;  %1604 = vmatprep.mubr.msk.bf16.mxu0 %vm1874_vm3, %v1873_v41 }
 0x731   :  { %1590 = vmatprep.subr.bf16.mxu0 %v1873_v41 }
 0x734   :  { %1591 = vmatpush3.bf16.msra.mxu0 %v1676_v23 }
 0x735   :  { %1592 = vmatprep.subr.bf16.mxu0 %v1873_v41 }
 0x738   :  { %1593 = vmatpush3.bf16.msra.mxu0 %v1677_v24 }
 0x739   :  { %1594 = vmatprep.subr.bf16.mxu0 %v1873_v41 }
 0x73c   :  { %1595 = vmatpush3.bf16.msra.mxu0 %v1678_v42 }
 0x73d   :  { %1596 = vmatprep.subr.bf16.mxu0 %v1873_v41 }
 0x740   :  { %1597 = vmatpush3.bf16.msra.mxu0 %v1679_v43 }
 0x741   :  { %1598 = vmatprep.subr.bf16.mxu0 %v1873_v41 }
 0x744   :  { %1599 = vmatpush3.bf16.msra.mxu0 %v1680_v45 }
 0x745   :  { %1600 = vmatprep.subr.bf16.mxu0 %v1873_v41 }
 0x748   :  { %1601 = vmatpush3.bf16.msra.mxu0 %v1681_v46 }
 0x749   :  { %1602 = vmatprep.subr.bf16.mxu0 %v1873_v41 }
 0x74c   :  { %1603 = vmatpush3.bf16.msra.mxu0 %v1682_v47 }
 0x802   :  { %v1323_v48 = vpop.f32.mrb[44].mxu0  ;;  %v1364_v49 = vpop.f32.mrb[44].mxu1 }
 0x803   :  { %v1371_v30 = vadd.f32 %v1323_v48, %v2577_v22  ;;  %v1373_v7 = vadd.f32 %v1364_v49, %v2578_v6  ;;  %v1325_v8 = vpop.f32.mrb[45].mxu0  ;;  %v1366_v9 = vpop.f32.mrb[45].mxu1 }
 0x804   :  { %v1372_v11 = vadd.f32 %v1325_v8, %v2579_v10  ;;  %v1374_v56 = vadd.f32 %v1366_v9, %v2580_v12  ;;  %v1327_v0 = vpop.f32.mrb[46].mxu0  ;;  %v1368_v15 = vpop.f32.mrb[46].mxu1 }
 0x805   :  { %v1375_v14 = vmul.f32 0.5, %v1371_v30  ;;  %v1328_v20 = vpop.f32.mrb[47].mxu0  ;;  %v1369_v13 = vpop.f32.mrb[47].mxu1  ;;  %v1377_v18 = vmul.f32 0.5, %v1373_v7 }
 0x806   :  { %v1376_v33 = vmul.f32 0.5, %v1372_v11 }
 0x807   :  { %1753 = vtanh.f32 %v1375_v14 }
 0x808   :  { %1755 = vtanh.f32 %v1376_v33 }
 0x809   :  { %1757 = vtanh.f32 %v1374_v56 }
 0x80a   :  { %1759 = vtanh.f32 %v1377_v18 }
 0x811   :  { %v1754_v21 = vpop.eup %1753 }
 0x812   :  { %v1381_v1 = vmul.f32 0.5, %v1754_v21  ;;  %v1756_v52 = vpop.eup %1755 }
 0x813   :  { %v1382_v44 = vmul.f32 0.5, %v1756_v52  ;;  %v1758_v29 = vpop.eup %1757 }
 0x814   :  { %v1384_v19 = vadd.f32 0.5, %v1381_v1  ;;  %v1760_v40 = vpop.eup %1759 }
 0x815   :  { %v1385_v16 = vadd.f32 0.5, %v1382_v44  ;;  %v1383_v63 = vmul.f32 0.5, %v1760_v40 }
 0x816   :  { %v1389_v62 = vmul.f32 %v1758_v29, %v1384_v19 }
 0x817   :  { %v1388_v39 = vmul.f32 %v1385_v16, %v2480_v35  ;;  %v1386_v3 = vadd.f32 0.5, %v1383_v63 }
 0x819   :  { %v1390_v50 = vadd.f32 %v1389_v62, %v1388_v39 }
 0x81b   :  { %1761 = vtanh.f32 %v1390_v50 }
 0x825   :  { %v1762_v2 = vpop.eup %1761 }
 0x826   :  { %v1392_v4 = vmul.f32 %v1762_v2, %v1386_v3 }
 0x828   :  { %v1393_v5 = vpack.c.bf16 %v1392_v4, %v1392_v4 }
 0x82a   :  { %1605 = vmatmul.mubr.bf16.vlgmr.msra.gmra.mrb[48].mxu0 %v1393_v5 }
 0x8fd   :  { %v1499_v25 = vpop.f32.mrb[48].mxu0 }
 0x8fe   :  { %v1500_v26 = vadd.f32 %v1570_v17, %v1499_v25  ;;  %v1606_v27 = vpop.f32.mrb[49].mxu0 }
 0x8ff   :  { %v1502_v28 = vpop.f32.mrb[50].mxu0 }
 0x900   :  { %1505 = vst [vmem:[#allocation8] sm:$0xff] %v1500_v26  ;;  %v1607_v51 = vpop.f32.mrb[51].mxu0 }
 0x901   :  { %1850 = shalt.err (!%p1847_p6)
}
 0x902   :  { %s1851_s5 = scalar_lea.hbm %s2533_s6, 128 }
 0x903   :  { %p1852_p7 = scmp.ne.s32.totalorder %s2533_s6, %s1851_s5  ;;  %p1855_p8 = scmp.lt.u32.totalorder %s1851_s5, %s2533_s6 }
 0x905   :  { %p1857_p9 = pnand %p1855_p8, %p1852_p7 }
 0x907   :  { %1860 = shalt.err (!%p1857_p9)
}
 0x908   :  { %1515 = dma.vmem_to_hbm [thread:$0]  %s1513_s29, 128, %s2533_s6, [#allocation5]  }
 0x909   :  { %1865 = dma.done.wait [#allocation5], 128  }
 0x90a   :  { %1866 = vsyncadd [#allocation5], 4294967168 }
 0x90b   :  { %1519 = vsyncpa [#allocation4], 1 }
 0x90c   :  { %1520 = vsyncpa [#allocation7], 1 }
 0x90d   :  { %1521 = vsyncpa [#allocation5], 1 }

</bundles_post_ra>
